<compile_context>
chip_gen: v5e
topology: v5e:2x2
jax: 0.10.0
libtpu: 0.0.40
codegen_flags: <defaults>
</compile_context>

<pallas_src>
import numpy as np
import jax
import jax.numpy as jnp
from jax import lax
from jax.experimental import pallas as pl
from jax.experimental.pallas import tpu as pltpu


# ----------------------------------------------------------------------------
# host-side glue: block sizing, weight repacking, constant masks/matrices
# ----------------------------------------------------------------------------
def _pick_samples_per_block(N, HW, lane_multiple=128):
    """Smallest number of batch samples folded into the lane axis such that the
    block lane width is a multiple of 128.  (On v7x you may cap this to keep
    >= 2 grid steps for the two TensorCores; on v5e/v6e bigger is fine.)"""
    for d in range(1, N + 1):
        if N % d == 0 and (d * HW) % lane_multiple == 0:
            return d
    return N  # fall back to one full-array block (always a legal block shape)


def _build_cru_weight(w_gwc, w_pwc1, group_size):
    """(C, (taps+1)*Ci): per-tap block-diagonal GWC weights, plus an identity
    tap holding PWC1, so GWC + PWC1 become a single matmul."""
    Co, Cig, KH, KW = w_gwc.shape
    Ci = Cig * group_size
    taps = KH * KW
    co_per = Co // group_size
    wg = np.asarray(w_gwc, np.float32)
    Wb = np.zeros((Co, (taps + 1) * Ci), np.float32)
    for t in range(taps):
        kh, kw = t // KW, t % KW
        for g in range(group_size):
            Wb[g * co_per:(g + 1) * co_per,
               t * Ci + g * Cig: t * Ci + (g + 1) * Cig] = \
                wg[g * co_per:(g + 1) * co_per, :, kh, kw]
    Wb[:, taps * Ci:] = np.asarray(w_pwc1, np.float32)
    return Wb


def _build_tap_masks_and_offsets(H, W, KH, KW, Nb):
    """Per-tap validity masks (zero padding) on the flattened (Nb*HW) lane axis
    and the matching (dh, dw) offset list (same enumeration order)."""
    HW = H * W
    offsets, masks = [], []
    for dh in range(-(KH // 2), KH // 2 + 1):
        for dw in range(-(KW // 2), KW // 2 + 1):
            offsets.append((dh, dw))
            m = np.zeros((H, W), np.float32)
            lo_h, hi_h = max(0, -dh), min(H, H - dh)
            lo_w, hi_w = max(0, -dw), min(W, W - dw)
            m[lo_h:hi_h, lo_w:hi_w] = 1.0
            masks.append(m.reshape(HW))
    masks = np.tile(np.stack(masks, axis=0), (1, Nb))        # (taps, Nb*HW)
    return offsets, masks


# ----------------------------------------------------------------------------
# Pallas implementation
# ----------------------------------------------------------------------------
def scconv_pallas(x, gamma, beta, w_sq1, w_sq2, w_gwc, b_gwc, w_pwc1, w_pwc2,
                  group_num=16, gate_threshold=0.5, eps=1e-10, group_size=2):
    N, C, H, W = x.shape
    HW = H * W
    assert C % group_num == 0 and C % 2 == 0
    Cg = C // group_num
    half = C // 2
    KH, KW = w_gwc.shape[2], w_gwc.shape[3]
    c_pwc2 = w_pwc2.shape[0]                              # op_channel - low//sq
    _ = c_pwc2

    Nb = _pick_samples_per_block(N, HW)                   # samples per block
    assert N % Nb == 0
    L = Nb * HW                                           # lane width per block
    n_g = float(Cg * HW)                                  # elems per (group, sample)

    offsets, masks_np = _build_tap_masks_and_offsets(H, W, KH, KW, Nb)
    w_big = jnp.asarray(_build_cru_weight(w_gwc, w_pwc1, group_size), jnp.bfloat16)
    masks = jnp.asarray(masks_np, jnp.float32)            # (taps, L)
    # 0/1 reduce-and-broadcast operators (channel-group and sample membership)
    gmat = jnp.asarray(np.kron(np.eye(group_num), np.ones((Cg, Cg))), jnp.float32)
    pmat = jnp.asarray(np.kron(np.eye(Nb), np.ones((HW, HW))), jnp.float32)

    # channels -> sublanes, (batch, spatial) -> lanes
    x_cl = jnp.transpose(x.reshape(N, C, HW).astype(jnp.float32),
                         (1, 0, 2)).reshape(C, N * HW)
    gamma2 = gamma.reshape(C, 1).astype(jnp.float32)
    beta2 = beta.reshape(C, 1).astype(jnp.float32)
    bgwc2 = b_gwc.reshape(C, 1).astype(jnp.float32)
    w_sq1_b = jnp.asarray(w_sq1, jnp.bfloat16)
    w_sq2_b = jnp.asarray(w_sq2, jnp.bfloat16)
    w_pwc2_b = jnp.asarray(w_pwc2, jnp.bfloat16)

    hi = jax.lax.Precision.HIGHEST
    f32 = jnp.float32
    bf16 = jnp.bfloat16

    def kernel(x_ref, gamma_ref, beta_ref, gmat_ref, pmat_ref, mask_ref,
               wsq1_ref, wsq2_ref, wbig_ref, bgwc_ref, wpwc2_ref, o_ref):
        xn = x_ref[...]                                   # (C, L) f32
        gam = gamma_ref[...]                              # (C, 1)
        bet = beta_ref[...]
        gmat_v = gmat_ref[...]                            # (C, C)
        pmat_v = pmat_ref[...]                            # (L, L)

        # ---------------- SRU : GroupBatchnorm2d ----------------
        # x @ P  -> per-sample per-channel sums, already lane-broadcast;
        # gmat @ -> per-group sums, channel-broadcast.  Kept in f32 (HIGHEST)
        # because the gate below is a hard sign threshold on gn.
        sums = jnp.dot(xn, pmat_v, precision=hi, preferred_element_type=f32)
        mean = jnp.dot(gmat_v, sums, precision=hi,
                       preferred_element_type=f32) * (1.0 / n_g)
        d = xn - mean
        ssq = jnp.dot(gmat_v,
                      jnp.dot(d * d, pmat_v, precision=hi,
                              preferred_element_type=f32),
                      precision=hi, preferred_element_type=f32)
        std = jnp.sqrt(ssq * (1.0 / (n_g - 1.0)))         # unbiased (torch.std)
        gn = d / (std + eps) * gam + bet

        # ---------------- SRU : gate + reconstruct ----------------
        w_gamma = gam / jnp.sum(gam, keepdims=True)
        score = gn * w_gamma
        if gate_threshold == 0.5:
            info = score >= 0.0        # sigmoid(t) >= 0.5  <=>  t >= 0
        else:
            info = jax.nn.sigmoid(score) >= gate_threshold
        x1 = jnp.where(info, xn, 0.0)
        x2 = xn - x1
        up_in = x1[:half] + x2[half:]                     # (C/2, L)
        low_in = x1[half:] + x2[:half]                    # (C/2, L)

        # ---------------- CRU : squeeze 1x1 convs (bf16 MXU) ----------------
        up_sq = jnp.dot(wsq1_ref[...], up_in.astype(bf16),
                        preferred_element_type=f32)       # (Csq, L) f32
        low_sq = jnp.dot(wsq2_ref[...], low_in.astype(bf16),
                         preferred_element_type=f32)      # (Csq, L) f32

        # ---------- CRU : GWC(3x3 grouped) + PWC1 fused in ONE matmul --------
        # 9 taps via lane rolls (XLU) + boundary masks, plus an identity tap.
        msk = mask_ref[...]                               # (taps, L)
        tap_rows = []
        for t, (dh, dw) in enumerate(offsets):
            delta = dh * W + dw
            if delta == 0:
                shifted = up_sq
            else:
                shifted = pltpu.roll(up_sq, shift=(-delta) % L, axis=1)
            tap_rows.append(shifted * msk[t:t + 1, :])
        tap_rows.append(up_sq)                            # identity tap -> PWC1
        taps_mat = jnp.concatenate(tap_rows, axis=0).astype(bf16)   # (80, L)

        y1 = jnp.dot(wbig_ref[...], taps_mat,
                     preferred_element_type=f32) + bgwc_ref[...]    # (C, L)
        pwc2 = jnp.dot(wpwc2_ref[...], low_sq.astype(bf16),
                       preferred_element_type=f32)                  # (24, L)

        # ---------- channel softmax over per-sample global avg-pool ----------
        out_cat = jnp.concatenate([y1, pwc2, low_sq], axis=0)       # (2C, L)
        pooled = jnp.dot(out_cat, pmat_v, precision=hi,
                         preferred_element_type=f32) * (1.0 / HW)   # (2C, L)
        m = jnp.max(pooled, axis=0, keepdims=True)
        e = jnp.exp(pooled - m)
        soft = e * pl.reciprocal(jnp.sum(e, axis=0, keepdims=True), approx=True)
        out = soft * out_cat

        # single lane-dense store
        o_ref[...] = out[:C] + out[C:]

    # NOTE: all weight/constant inputs have constant index_maps; they stay
    # resident across grid steps (tiny anyway: < 200 KiB total).
    out_cl = pl.pallas_call(
        kernel,
        out_shape=jax.ShapeDtypeStruct((C, N * HW), jnp.float32),
        grid=(N // Nb,),
        in_specs=[
            pl.BlockSpec((C, L), lambda g: (0, g)),                 # x slab
            pl.BlockSpec((C, 1), lambda g: (0, 0)),                 # gamma
            pl.BlockSpec((C, 1), lambda g: (0, 0)),                 # beta
            pl.BlockSpec((C, C), lambda g: (0, 0)),                 # group membership
            pl.BlockSpec((L, L), lambda g: (0, 0)),                 # sample membership
            pl.BlockSpec(masks.shape, lambda g: (0, 0)),            # tap masks
            pl.BlockSpec(w_sq1_b.shape, lambda g: (0, 0)),          # squeeze1 (bf16)
            pl.BlockSpec(w_sq2_b.shape, lambda g: (0, 0)),          # squeeze2 (bf16)
            pl.BlockSpec(w_big.shape, lambda g: (0, 0)),            # GWC+PWC1 (bf16)
            pl.BlockSpec((C, 1), lambda g: (0, 0)),                 # GWC bias
            pl.BlockSpec(w_pwc2_b.shape, lambda g: (0, 0)),         # PWC2 (bf16)
        ],
        out_specs=pl.BlockSpec((C, L), lambda g: (0, g)),
        compiler_params=pltpu.CompilerParams(dimension_semantics=("parallel",)),
    )(x_cl, gamma2, beta2, gmat, pmat, masks,
      w_sq1_b, w_sq2_b, w_big, bgwc2, w_pwc2_b)

    return out_cl.reshape(C, N, HW).transpose(1, 0, 2).reshape(N, C, H, W)


# ----------------------------------------------------------------------------
# pure-JAX reference (mirrors the PyTorch forward) for verification
# ----------------------------------------------------------------------------
def scconv_ref(x, gamma, beta, w_sq1, w_sq2, w_gwc, b_gwc, w_pwc1, w_pwc2,
               group_num=16, gate_threshold=0.5, eps=1e-10, group_size=2):
    N, C, H, W = x.shape
    hi = jax.lax.Precision.HIGHEST
    g3 = gamma.reshape(C, 1, 1)
    b3 = beta.reshape(C, 1, 1)

    # GroupBatchnorm2d (torch.std is unbiased)
    xr = x.reshape(N, group_num, -1)
    mean = xr.mean(axis=2, keepdims=True)
    std = jnp.sqrt(jnp.sum((xr - mean) ** 2, axis=2, keepdims=True)
                   / (xr.shape[2] - 1))
    gn = ((xr - mean) / (std + eps)).reshape(N, C, H, W) * g3 + b3

    # SRU
    w_gamma = g3 / gamma.sum()
    rew = jax.nn.sigmoid(gn * w_gamma)
    info = rew >= gate_threshold
    x1 = jnp.where(info, x, 0.0)
    x2 = jnp.where(info, 0.0, x)
    h = C // 2
    sru = jnp.concatenate([x1[:, :h] + x2[:, h:], x1[:, h:] + x2[:, :h]], axis=1)

    # CRU
    up, low = sru[:, :h], sru[:, h:]
    up_sq = jnp.einsum('oi,nihw->nohw', w_sq1, up, precision=hi)
    low_sq = jnp.einsum('oi,nihw->nohw', w_sq2, low, precision=hi)
    kh, kw = w_gwc.shape[2] // 2, w_gwc.shape[3] // 2
    gwc = lax.conv_general_dilated(
        up_sq, w_gwc, window_strides=(1, 1), padding=((kh, kh), (kw, kw)),
        dimension_numbers=('NCHW', 'OIHW', 'NCHW'),
        feature_group_count=group_size, precision=hi) + b_gwc.reshape(1, C, 1, 1)
    y1 = gwc + jnp.einsum('oi,nihw->nohw', w_pwc1, up_sq, precision=hi)
    y2 = jnp.concatenate([jnp.einsum('oi,nihw->nohw', w_pwc2, low_sq, precision=hi),
                          low_sq], axis=1)
    out = jnp.concatenate([y1, y2], axis=1)
    pooled = out.mean(axis=(2, 3), keepdims=True)
    soft = jax.nn.softmax(pooled, axis=1)
    out = soft * out
    return out[:, :C] + out[:, C:]


# ----------------------------------------------------------------------------
if __name__ == "__main__":
    # module defaults: op_channel=32, group_num=16, alpha=0.5, squeeze_radio=2,
    # group_size=2, group_kernel_size=3
    N, C, H, W = 2, 32, 8, 8
    squeeze_radio, group_size = 2, 2
    up_ch = low_ch = C // 2
    up_sq_ch, low_sq_ch = up_ch // squeeze_radio, low_ch // squeeze_radio  # 8, 8

    key = jax.random.PRNGKey(0)
    ks = jax.random.split(key, 9)
    x = jax.random.normal(ks[0], (N, C, H, W), jnp.float32)
    gamma = jax.random.normal(ks[1], (C,), jnp.float32)          # torch.randn
    beta = jnp.zeros((C,), jnp.float32)                          # torch.zeros
    w_sq1 = 0.2 * jax.random.normal(ks[2], (up_sq_ch, up_ch), jnp.float32)
    w_sq2 = 0.2 * jax.random.normal(ks[3], (low_sq_ch, low_ch), jnp.float32)
    w_gwc = 0.2 * jax.random.normal(ks[4], (C, up_sq_ch // group_size, 3, 3),
                                    jnp.float32)
    b_gwc = 0.1 * jax.random.normal(ks[5], (C,), jnp.float32)
    w_pwc1 = 0.2 * jax.random.normal(ks[6], (C, up_sq_ch), jnp.float32)
    w_pwc2 = 0.2 * jax.random.normal(ks[7], (C - low_sq_ch, low_sq_ch),
                                     jnp.float32)

    out = scconv_pallas(x, gamma, beta, w_sq1, w_sq2, w_gwc, b_gwc,
                        w_pwc1, w_pwc2)
    out = jax.block_until_ready(out)

    ref = scconv_ref(x, gamma, beta, w_sq1, w_sq2, w_gwc, b_gwc,
                     w_pwc1, w_pwc2)
    ref = jax.block_until_ready(ref)

    max_err = float(jnp.max(jnp.abs(out - ref)))
    # CRU matmuls use bf16 operands (f32 accumulate) -> tolerance is relaxed
    # accordingly vs. the f32 reference.
    if not np.allclose(np.asarray(out), np.asarray(ref), rtol=5e-2, atol=5e-3):
        raise AssertionError(f"Pallas output mismatch, max abs err = {max_err}")
    print("KERNEL_OK")
</pallas_src>

<mosaic_0001>
module attributes {stable_mosaic.version = 11 : i64} {
  func.func @kernel(%arg0: i32, %arg1: memref<32x128xf32, #tpu.memory_space<vmem>>, %arg2: memref<32x1xf32, #tpu.memory_space<vmem>>, %arg3: memref<32x1xf32, #tpu.memory_space<vmem>>, %arg4: memref<32x32xf32, #tpu.memory_space<vmem>>, %arg5: memref<128x128xf32, #tpu.memory_space<vmem>>, %arg6: memref<9x128xf32, #tpu.memory_space<vmem>>, %arg7: memref<8x16xbf16, #tpu.memory_space<vmem>>, %arg8: memref<8x16xbf16, #tpu.memory_space<vmem>>, %arg9: memref<32x80xbf16, #tpu.memory_space<vmem>>, %arg10: memref<32x1xf32, #tpu.memory_space<vmem>>, %arg11: memref<24x8xbf16, #tpu.memory_space<vmem>>, %arg12: memref<32x128xf32, #tpu.memory_space<vmem>>) attributes {dimension_semantics = [#tpu.dimension_semantics<parallel>], iteration_bounds = array<i64: 1>, scalar_prefetch = 0 : i64, scratch_operands = 0 : i64, tpu.core_type = #tpu.core_type<tc>, window_params = [{transform_indices = @transform_0, window_bounds = array<i64: 32, 128>}, {pipeline_mode = #tpu.pipeline_mode<synchronous>, transform_indices = @transform_1, window_bounds = array<i64: 32, 1>}, {pipeline_mode = #tpu.pipeline_mode<synchronous>, transform_indices = @transform_2, window_bounds = array<i64: 32, 1>}, {pipeline_mode = #tpu.pipeline_mode<synchronous>, transform_indices = @transform_3, window_bounds = array<i64: 32, 32>}, {pipeline_mode = #tpu.pipeline_mode<synchronous>, transform_indices = @transform_4, window_bounds = array<i64: 128, 128>}, {pipeline_mode = #tpu.pipeline_mode<synchronous>, transform_indices = @transform_5, window_bounds = array<i64: 9, 128>}, {pipeline_mode = #tpu.pipeline_mode<synchronous>, transform_indices = @transform_6, window_bounds = array<i64: 8, 16>}, {pipeline_mode = #tpu.pipeline_mode<synchronous>, transform_indices = @transform_7, window_bounds = array<i64: 8, 16>}, {pipeline_mode = #tpu.pipeline_mode<synchronous>, transform_indices = @transform_8, window_bounds = array<i64: 32, 80>}, {pipeline_mode = #tpu.pipeline_mode<synchronous>, transform_indices = @transform_9, window_bounds = array<i64: 32, 1>}, {pipeline_mode = #tpu.pipeline_mode<synchronous>, transform_indices = @transform_10, window_bounds = array<i64: 24, 8>}, {transform_indices = @transform_11, window_bounds = array<i64: 32, 128>}]} {
    %c0 = arith.constant 0 : index
    %c0_0 = arith.constant 0 : index
    %0 = vector.load %arg1[%c0, %c0_0] : memref<32x128xf32, #tpu.memory_space<vmem>>, vector<32x128xf32>
    %c0_1 = arith.constant 0 : index
    %c0_2 = arith.constant 0 : index
    %1 = vector.load %arg2[%c0_1, %c0_2] : memref<32x1xf32, #tpu.memory_space<vmem>>, vector<32x1xf32>
    %c0_3 = arith.constant 0 : index
    %c0_4 = arith.constant 0 : index
    %2 = vector.load %arg3[%c0_3, %c0_4] : memref<32x1xf32, #tpu.memory_space<vmem>>, vector<32x1xf32>
    %c0_5 = arith.constant 0 : index
    %c0_6 = arith.constant 0 : index
    %3 = vector.load %arg4[%c0_5, %c0_6] : memref<32x32xf32, #tpu.memory_space<vmem>>, vector<32x32xf32>
    %c0_7 = arith.constant 0 : index
    %c0_8 = arith.constant 0 : index
    %4 = vector.load %arg5[%c0_7, %c0_8] : memref<128x128xf32, #tpu.memory_space<vmem>>, vector<128x128xf32>
    %cst = arith.constant dense<0.000000e+00> : vector<32x128xf32>
    %5 = tpu.matmul %0, %4, %cst {dimension_numbers = #tpu.dot_dimension_numbers<[1], [0], [0], [1], [0, 0, 1, 1], [], []>, precision = #tpu.contract_precision<fp32>} : vector<32x128xf32>, vector<128x128xf32>, vector<32x128xf32> -> vector<32x128xf32>
    %cst_9 = arith.constant dense<0.000000e+00> : vector<32x128xf32>
    %6 = tpu.matmul %3, %5, %cst_9 {dimension_numbers = #tpu.dot_dimension_numbers<[1], [0], [0], [1], [0, 0, 1, 1], [], []>, precision = #tpu.contract_precision<fp32>} : vector<32x32xf32>, vector<32x128xf32>, vector<32x128xf32> -> vector<32x128xf32>
    %cst_10 = arith.constant 7.812500e-03 : f32
    %7 = vector.broadcast %cst_10 : f32 to vector<32x128xf32>
    %8 = arith.mulf %6, %7 : vector<32x128xf32>
    %9 = arith.subf %0, %8 : vector<32x128xf32>
    %10 = arith.mulf %9, %9 : vector<32x128xf32>
    %cst_11 = arith.constant dense<0.000000e+00> : vector<32x128xf32>
    %11 = tpu.matmul %10, %4, %cst_11 {dimension_numbers = #tpu.dot_dimension_numbers<[1], [0], [0], [1], [0, 0, 1, 1], [], []>, precision = #tpu.contract_precision<fp32>} : vector<32x128xf32>, vector<128x128xf32>, vector<32x128xf32> -> vector<32x128xf32>
    %cst_12 = arith.constant dense<0.000000e+00> : vector<32x128xf32>
    %12 = tpu.matmul %3, %11, %cst_12 {dimension_numbers = #tpu.dot_dimension_numbers<[1], [0], [0], [1], [0, 0, 1, 1], [], []>, precision = #tpu.contract_precision<fp32>} : vector<32x32xf32>, vector<32x128xf32>, vector<32x128xf32> -> vector<32x128xf32>
    %cst_13 = arith.constant 0.00787401571 : f32
    %13 = vector.broadcast %cst_13 : f32 to vector<32x128xf32>
    %14 = arith.mulf %12, %13 : vector<32x128xf32>
    %15 = math.sqrt %14 : vector<32x128xf32>
    %cst_14 = arith.constant 1.000000e-10 : f32
    %16 = vector.broadcast %cst_14 : f32 to vector<32x128xf32>
    %17 = arith.addf %15, %16 : vector<32x128xf32>
    %18 = arith.divf %9, %17 : vector<32x128xf32>
    %19 = vector.broadcast %1 : vector<32x1xf32> to vector<32x128xf32>
    %20 = arith.mulf %18, %19 : vector<32x128xf32>
    %21 = vector.broadcast %2 : vector<32x1xf32> to vector<32x128xf32>
    %22 = arith.addf %20, %21 : vector<32x128xf32>
    %23 = vector.shape_cast %1 : vector<32x1xf32> to vector<1x32x1xf32>
    %cst_15 = arith.constant dense<0.000000e+00> : vector<1xf32>
    %24 = vector.multi_reduction <add>, %23, %cst_15 [1, 2] : vector<1x32x1xf32> to vector<1xf32>
    %25 = vector.shape_cast %24 : vector<1xf32> to vector<1x1x1xf32>
    %26 = vector.extract %25[0, 0, 0] : f32 from vector<1x1x1xf32>
    %27 = vector.broadcast %26 : f32 to vector<1x1xf32>
    %28 = vector.broadcast %27 : vector<1x1xf32> to vector<32x1xf32>
    %29 = arith.divf %1, %28 : vector<32x1xf32>
    %30 = vector.broadcast %29 : vector<32x1xf32> to vector<32x128xf32>
    %31 = arith.mulf %22, %30 : vector<32x128xf32>
    %cst_16 = arith.constant 0.000000e+00 : f32
    %32 = vector.broadcast %cst_16 : f32 to vector<32x128xf32>
    %33 = arith.cmpf oge, %31, %32 : vector<32x128xf32>
    %cst_17 = arith.constant 0.000000e+00 : f32
    %34 = vector.broadcast %cst_17 : f32 to vector<32x128xf32>
    %35 = arith.select %33, %0, %34 : vector<32x128xi1>, vector<32x128xf32>
    %36 = arith.subf %0, %35 : vector<32x128xf32>
    %37 = vector.extract_strided_slice %35 {offsets = [0, 0], sizes = [16, 128], strides = [1, 1]} : vector<32x128xf32> to vector<16x128xf32>
    %38 = vector.extract_strided_slice %36 {offsets = [16, 0], sizes = [16, 128], strides = [1, 1]} : vector<32x128xf32> to vector<16x128xf32>
    %39 = arith.addf %37, %38 : vector<16x128xf32>
    %40 = vector.extract_strided_slice %35 {offsets = [16, 0], sizes = [16, 128], strides = [1, 1]} : vector<32x128xf32> to vector<16x128xf32>
    %41 = vector.extract_strided_slice %36 {offsets = [0, 0], sizes = [16, 128], strides = [1, 1]} : vector<32x128xf32> to vector<16x128xf32>
    %42 = arith.addf %40, %41 : vector<16x128xf32>
    %c0_18 = arith.constant 0 : index
    %c0_19 = arith.constant 0 : index
    %43 = vector.load %arg7[%c0_18, %c0_19] : memref<8x16xbf16, #tpu.memory_space<vmem>>, vector<8x16xbf16>
    %44 = arith.truncf %39 : vector<16x128xf32> to vector<16x128xbf16>
    %cst_20 = arith.constant dense<0.000000e+00> : vector<8x128xf32>
    %45 = tpu.matmul %43, %44, %cst_20 {dimension_numbers = #tpu.dot_dimension_numbers<[1], [0], [0], [1], [0, 0, 1, 1], [], []>} : vector<8x16xbf16>, vector<16x128xbf16>, vector<8x128xf32> -> vector<8x128xf32>
    %c0_21 = arith.constant 0 : index
    %c0_22 = arith.constant 0 : index
    %46 = vector.load %arg8[%c0_21, %c0_22] : memref<8x16xbf16, #tpu.memory_space<vmem>>, vector<8x16xbf16>
    %47 = arith.truncf %42 : vector<16x128xf32> to vector<16x128xbf16>
    %cst_23 = arith.constant dense<0.000000e+00> : vector<8x128xf32>
    %48 = tpu.matmul %46, %47, %cst_23 {dimension_numbers = #tpu.dot_dimension_numbers<[1], [0], [0], [1], [0, 0, 1, 1], [], []>} : vector<8x16xbf16>, vector<16x128xbf16>, vector<8x128xf32> -> vector<8x128xf32>
    %c0_24 = arith.constant 0 : index
    %c0_25 = arith.constant 0 : index
    %49 = vector.load %arg6[%c0_24, %c0_25] : memref<9x128xf32, #tpu.memory_space<vmem>>, vector<9x128xf32>
    %c9_i32 = arith.constant 9 : i32
    %50 = tpu.dynamic_rotate %45 by %c9_i32 dim 1 : vector<8x128xf32>, i32 -> vector<8x128xf32>
    %51 = vector.extract_strided_slice %49 {offsets = [0, 0], sizes = [1, 128], strides = [1, 1]} : vector<9x128xf32> to vector<1x128xf32>
    %52 = vector.broadcast %51 : vector<1x128xf32> to vector<8x128xf32>
    %53 = arith.mulf %50, %52 : vector<8x128xf32>
    %c8_i32 = arith.constant 8 : i32
    %54 = tpu.dynamic_rotate %45 by %c8_i32 dim 1 : vector<8x128xf32>, i32 -> vector<8x128xf32>
    %55 = vector.extract_strided_slice %49 {offsets = [1, 0], sizes = [1, 128], strides = [1, 1]} : vector<9x128xf32> to vector<1x128xf32>
    %56 = vector.broadcast %55 : vector<1x128xf32> to vector<8x128xf32>
    %57 = arith.mulf %54, %56 : vector<8x128xf32>
    %c7_i32 = arith.constant 7 : i32
    %58 = tpu.dynamic_rotate %45 by %c7_i32 dim 1 : vector<8x128xf32>, i32 -> vector<8x128xf32>
    %59 = vector.extract_strided_slice %49 {offsets = [2, 0], sizes = [1, 128], strides = [1, 1]} : vector<9x128xf32> to vector<1x128xf32>
    %60 = vector.broadcast %59 : vector<1x128xf32> to vector<8x128xf32>
    %61 = arith.mulf %58, %60 : vector<8x128xf32>
    %c1_i32 = arith.constant 1 : i32
    %62 = tpu.dynamic_rotate %45 by %c1_i32 dim 1 : vector<8x128xf32>, i32 -> vector<8x128xf32>
    %63 = vector.extract_strided_slice %49 {offsets = [3, 0], sizes = [1, 128], strides = [1, 1]} : vector<9x128xf32> to vector<1x128xf32>
    %64 = vector.broadcast %63 : vector<1x128xf32> to vector<8x128xf32>
    %65 = arith.mulf %62, %64 : vector<8x128xf32>
    %66 = vector.extract_strided_slice %49 {offsets = [4, 0], sizes = [1, 128], strides = [1, 1]} : vector<9x128xf32> to vector<1x128xf32>
    %67 = vector.broadcast %66 : vector<1x128xf32> to vector<8x128xf32>
    %68 = arith.mulf %45, %67 : vector<8x128xf32>
    %c127_i32 = arith.constant 127 : i32
    %69 = tpu.dynamic_rotate %45 by %c127_i32 dim 1 : vector<8x128xf32>, i32 -> vector<8x128xf32>
    %70 = vector.extract_strided_slice %49 {offsets = [5, 0], sizes = [1, 128], strides = [1, 1]} : vector<9x128xf32> to vector<1x128xf32>
    %71 = vector.broadcast %70 : vector<1x128xf32> to vector<8x128xf32>
    %72 = arith.mulf %69, %71 : vector<8x128xf32>
    %c121_i32 = arith.constant 121 : i32
    %73 = tpu.dynamic_rotate %45 by %c121_i32 dim 1 : vector<8x128xf32>, i32 -> vector<8x128xf32>
    %74 = vector.extract_strided_slice %49 {offsets = [6, 0], sizes = [1, 128], strides = [1, 1]} : vector<9x128xf32> to vector<1x128xf32>
    %75 = vector.broadcast %74 : vector<1x128xf32> to vector<8x128xf32>
    %76 = arith.mulf %73, %75 : vector<8x128xf32>
    %c120_i32 = arith.constant 120 : i32
    %77 = tpu.dynamic_rotate %45 by %c120_i32 dim 1 : vector<8x128xf32>, i32 -> vector<8x128xf32>
    %78 = vector.extract_strided_slice %49 {offsets = [7, 0], sizes = [1, 128], strides = [1, 1]} : vector<9x128xf32> to vector<1x128xf32>
    %79 = vector.broadcast %78 : vector<1x128xf32> to vector<8x128xf32>
    %80 = arith.mulf %77, %79 : vector<8x128xf32>
    %c119_i32 = arith.constant 119 : i32
    %81 = tpu.dynamic_rotate %45 by %c119_i32 dim 1 : vector<8x128xf32>, i32 -> vector<8x128xf32>
    %82 = vector.extract_strided_slice %49 {offsets = [8, 0], sizes = [1, 128], strides = [1, 1]} : vector<9x128xf32> to vector<1x128xf32>
    %83 = vector.broadcast %82 : vector<1x128xf32> to vector<8x128xf32>
    %84 = arith.mulf %81, %83 : vector<8x128xf32>
    %85 = tpu.concatenate %53, %57, %61, %65, %68, %72, %76, %80, %84, %45 in 0 : vector<8x128xf32>, vector<8x128xf32>, vector<8x128xf32>, vector<8x128xf32>, vector<8x128xf32>, vector<8x128xf32>, vector<8x128xf32>, vector<8x128xf32>, vector<8x128xf32>, vector<8x128xf32> -> vector<80x128xf32>
    %86 = arith.truncf %85 : vector<80x128xf32> to vector<80x128xbf16>
    %c0_26 = arith.constant 0 : index
    %c0_27 = arith.constant 0 : index
    %87 = vector.load %arg9[%c0_26, %c0_27] : memref<32x80xbf16, #tpu.memory_space<vmem>>, vector<32x80xbf16>
    %cst_28 = arith.constant dense<0.000000e+00> : vector<32x128xf32>
    %88 = tpu.matmul %87, %86, %cst_28 {dimension_numbers = #tpu.dot_dimension_numbers<[1], [0], [0], [1], [0, 0, 1, 1], [], []>} : vector<32x80xbf16>, vector<80x128xbf16>, vector<32x128xf32> -> vector<32x128xf32>
    %c0_29 = arith.constant 0 : index
    %c0_30 = arith.constant 0 : index
    %89 = vector.load %arg10[%c0_29, %c0_30] : memref<32x1xf32, #tpu.memory_space<vmem>>, vector<32x1xf32>
    %90 = vector.broadcast %89 : vector<32x1xf32> to vector<32x128xf32>
    %91 = arith.addf %88, %90 : vector<32x128xf32>
    %c0_31 = arith.constant 0 : index
    %c0_32 = arith.constant 0 : index
    %92 = vector.load %arg11[%c0_31, %c0_32] : memref<24x8xbf16, #tpu.memory_space<vmem>>, vector<24x8xbf16>
    %93 = arith.truncf %48 : vector<8x128xf32> to vector<8x128xbf16>
    %cst_33 = arith.constant dense<0.000000e+00> : vector<24x128xf32>
    %94 = tpu.matmul %92, %93, %cst_33 {dimension_numbers = #tpu.dot_dimension_numbers<[1], [0], [0], [1], [0, 0, 1, 1], [], []>} : vector<24x8xbf16>, vector<8x128xbf16>, vector<24x128xf32> -> vector<24x128xf32>
    %95 = tpu.concatenate %91, %94, %48 in 0 : vector<32x128xf32>, vector<24x128xf32>, vector<8x128xf32> -> vector<64x128xf32>
    %cst_34 = arith.constant dense<0.000000e+00> : vector<64x128xf32>
    %96 = tpu.matmul %95, %4, %cst_34 {dimension_numbers = #tpu.dot_dimension_numbers<[1], [0], [0], [1], [0, 0, 1, 1], [], []>, precision = #tpu.contract_precision<fp32>} : vector<64x128xf32>, vector<128x128xf32>, vector<64x128xf32> -> vector<64x128xf32>
    %cst_35 = arith.constant 1.562500e-02 : f32
    %97 = vector.broadcast %cst_35 : f32 to vector<64x128xf32>
    %98 = arith.mulf %96, %97 : vector<64x128xf32>
    %cst_36 = arith.constant dense<0xFF800000> : vector<128xf32>
    %99 = vector.multi_reduction <maximumf>, %98, %cst_36 [0] : vector<64x128xf32> to vector<128xf32>
    %100 = vector.shape_cast %99 : vector<128xf32> to vector<1x128xf32>
    %101 = vector.broadcast %100 : vector<1x128xf32> to vector<64x128xf32>
    %102 = arith.subf %98, %101 : vector<64x128xf32>
    %103 = math.exp %102 : vector<64x128xf32>
    %cst_37 = arith.constant dense<0.000000e+00> : vector<128xf32>
    %104 = vector.multi_reduction <add>, %103, %cst_37 [0] : vector<64x128xf32> to vector<128xf32>
    %105 = vector.shape_cast %104 : vector<128xf32> to vector<1x128xf32>
    %106 = tpu.reciprocal %105 {approx = true} : vector<1x128xf32> -> vector<1x128xf32>
    %107 = vector.broadcast %106 : vector<1x128xf32> to vector<64x128xf32>
    %108 = arith.mulf %103, %107 : vector<64x128xf32>
    %109 = arith.mulf %108, %95 : vector<64x128xf32>
    %110 = vector.extract_strided_slice %109 {offsets = [0, 0], sizes = [32, 128], strides = [1, 1]} : vector<64x128xf32> to vector<32x128xf32>
    %111 = vector.extract_strided_slice %109 {offsets = [32, 0], sizes = [32, 128], strides = [1, 1]} : vector<64x128xf32> to vector<32x128xf32>
    %112 = arith.addf %110, %111 : vector<32x128xf32>
    %c0_38 = arith.constant 0 : index
    %c0_39 = arith.constant 0 : index
    %113 = vector.load %arg12[%c0_38, %c0_39] : memref<32x128xf32, #tpu.memory_space<vmem>>, vector<32x128xf32>
    tpu.vector_store %arg12[%c0_38, %c0_39], %112 {strides = array<i32>} : memref<32x128xf32, #tpu.memory_space<vmem>>, vector<32x128xf32>,
    return
  }
  func.func @transform_0(%arg0: i32) -> (i32, i32) {
    %c0_i32 = arith.constant 0 : i32
    %c0_i32_0 = arith.constant 0 : i32
    return %c0_i32, %arg0 : i32, i32
  }
  func.func @transform_1(%arg0: i32) -> (i32, i32) {
    %c0_i32 = arith.constant 0 : i32
    %c0_i32_0 = arith.constant 0 : i32
    %c0_i32_1 = arith.constant 0 : i32
    return %c0_i32, %c0_i32_0 : i32, i32
  }
  func.func @transform_2(%arg0: i32) -> (i32, i32) {
    %c0_i32 = arith.constant 0 : i32
    %c0_i32_0 = arith.constant 0 : i32
    %c0_i32_1 = arith.constant 0 : i32
    return %c0_i32, %c0_i32_0 : i32, i32
  }
  func.func @transform_3(%arg0: i32) -> (i32, i32) {
    %c0_i32 = arith.constant 0 : i32
    %c0_i32_0 = arith.constant 0 : i32
    %c0_i32_1 = arith.constant 0 : i32
    return %c0_i32, %c0_i32_0 : i32, i32
  }
  func.func @transform_4(%arg0: i32) -> (i32, i32) {
    %c0_i32 = arith.constant 0 : i32
    %c0_i32_0 = arith.constant 0 : i32
    %c0_i32_1 = arith.constant 0 : i32
    return %c0_i32, %c0_i32_0 : i32, i32
  }
  func.func @transform_5(%arg0: i32) -> (i32, i32) {
    %c0_i32 = arith.constant 0 : i32
    %c0_i32_0 = arith.constant 0 : i32
    %c0_i32_1 = arith.constant 0 : i32
    return %c0_i32, %c0_i32_0 : i32, i32
  }
  func.func @transform_6(%arg0: i32) -> (i32, i32) {
    %c0_i32 = arith.constant 0 : i32
    %c0_i32_0 = arith.constant 0 : i32
    %c0_i32_1 = arith.constant 0 : i32
    return %c0_i32, %c0_i32_0 : i32, i32
  }
  func.func @transform_7(%arg0: i32) -> (i32, i32) {
    %c0_i32 = arith.constant 0 : i32
    %c0_i32_0 = arith.constant 0 : i32
    %c0_i32_1 = arith.constant 0 : i32
    return %c0_i32, %c0_i32_0 : i32, i32
  }
  func.func @transform_8(%arg0: i32) -> (i32, i32) {
    %c0_i32 = arith.constant 0 : i32
    %c0_i32_0 = arith.constant 0 : i32
    %c0_i32_1 = arith.constant 0 : i32
    return %c0_i32, %c0_i32_0 : i32, i32
  }
  func.func @transform_9(%arg0: i32) -> (i32, i32) {
    %c0_i32 = arith.constant 0 : i32
    %c0_i32_0 = arith.constant 0 : i32
    %c0_i32_1 = arith.constant 0 : i32
    return %c0_i32, %c0_i32_0 : i32, i32
  }
  func.func @transform_10(%arg0: i32) -> (i32, i32) {
    %c0_i32 = arith.constant 0 : i32
    %c0_i32_0 = arith.constant 0 : i32
    %c0_i32_1 = arith.constant 0 : i32
    return %c0_i32, %c0_i32_0 : i32, i32
  }
  func.func @transform_11(%arg0: i32) -> (i32, i32) {
    %c0_i32 = arith.constant 0 : i32
    %c0_i32_0 = arith.constant 0 : i32
    return %c0_i32, %arg0 : i32, i32
  }
}

</mosaic_0001>

<bundles_post_ra>
// kernel: tpu_custom_call.1
= control target key start
LH: loop header
LB: loop body
LE: loop exit
PB: predicated region body
PF: predicated region fallthrough
CT: control target
= control target key end

     0   :  { %16 = vsyncpa [#allocation3], 0  ;;  %s3735_s0 = inlined_call_operand.vmem [shape: f32[32,128], index: 0, kind: input, shape index: {}]   ;;  %s3736_s1 = inlined_call_operand.vmem [shape: f32[32,1], index: 1, kind: input, shape index: {}]   ;;  %s3737_s2 = inlined_call_operand.vmem [shape: f32[32,1], index: 2, kind: input, shape index: {}]   ;;  %s3738_s3 = inlined_call_operand.vmem [shape: f32[32,32], index: 3, kind: input, shape index: {}]   ;;  %s3739_s4 = inlined_call_operand.hbm [shape: f32[128,128], index: 4, kind: input, shape index: {}]   ;;  %s3740_s5 = inlined_call_operand.vmem [shape: f32[9,128], index: 5, kind: input, shape index: {}]   ;;  %s3741_s6 = inlined_call_operand.vmem [shape: bf16[8,16], index: 6, kind: input, shape index: {}]   ;;  %s3742_s7 = inlined_call_operand.vmem [shape: bf16[8,16], index: 7, kind: input, shape index: {}]   ;;  %s3743_s8 = inlined_call_operand.vmem [shape: bf16[32,80], index: 8, kind: input, shape index: {}]   ;;  %s3744_s9 = inlined_call_operand.vmem [shape: f32[32,1], index: 9, kind: input, shape index: {}]   ;;  %s3745_s10 = inlined_call_operand.vmem [shape: bf16[24,8], index: 10, kind: input, shape index: {}]   ;;  %s3746_s11 = inlined_call_operand.hbm [shape: f32[32,128], index: 11, kind: output, shape index: {}]  }
   0x1   :  { %17 = vsyncpa [#allocation4], 0  ;;  %s30_s19 = sshll.u32 %s3739_s4, 4  ;;  %s2751_s20 = smov [#allocation2]   ;;  %s31_s19 = int_to_ptr.hbm [resolvable:$true] %s30_s19 }
   0x2   :  { %s32_s21 = sshll.u32 %s2751_s20, 4  ;;  %s2752_s22 = smov 128   ;;  %s33_s21 = int_to_ptr.vmem [resolvable:$true] %s32_s21 }
   0x3   :  { %s2753_s23 = smov 8  }
   0x4   :  { %38 = dma.hbm_to_vmem [thread:$0]  %s31_s19, 2048, %s33_s21, [#allocation3], %s2752_s22, %s2752_s22, %s2753_s23  }
   0x5   :  { %2747 = dma.done.wait [#allocation3], 2048  }
   0x6   :  { %2748 = vsyncadd [#allocation3], 4294965248  ;;  %v87_v0 = vld [vmem:[#allocation2 + $0x78] sm:$0xff]  ;;  %v86_v1 = vld [vmem:[#allocation2 + $0x70] sm:$0xff]  ;;  %vm522_vm0 = vcmask 261120   ;;  %vm1701_vm1 = vcmask 7168  }
   0x7   :  { %v85_v2 = vld [vmem:[#allocation2 + $0x68] sm:$0xff]  ;;  %v2829_v3 = vand.u32 4294901760, %v87_v0  ;;  %v2831_v4 = vand.u32 4294901760, %v86_v1  ;;  %v84_v6 = vld [vmem:[#allocation2 + $0x60] sm:$0xff]  ;;  %v83_v7 = vld [vmem:[#allocation2 + $0x58] sm:$0xff]  ;;  %s2755_s26 = smov 120  }
   0x8   :  { %v2833_v5 = vand.u32 4294901760, %v85_v2  ;;  %v82_v8 = vld [vmem:[#allocation2 + $0x50] sm:$0xff]  ;;  %v2835_v9 = vand.u32 4294901760, %v84_v6  ;;  %v2837_v10 = vand.u32 4294901760, %v83_v7  ;;  %v81_v12 = vld [vmem:[#allocation2 + $0x48] sm:$0xff]  ;;  %v80_v13 = vld [vmem:[#allocation2 + $0x40] sm:$0xff] }
   0x9   :  { %3858 = vst [vmem:[#allocation8_spill] sm:$0xff] %v2831_v4  ;;  %v2839_v11 = vand.u32 4294901760, %v82_v8  ;;  %89 = vmatpush.msra.mxu2 %v2829_v3  ;;  %v2843_v14 = vsub.f32 %v87_v0, %v2829_v3  ;;  %v2846_v15 = vsub.f32 %v86_v1, %v2831_v4  ;;  %v2848_v16 = vand.u32 4294901760, %v81_v12  ;;  %v79_v18 = vld [vmem:[#allocation2 + $0x38] sm:$0xff]  ;;  %474 = vmatpush.msra.mxu1 %v2829_v3  ;;  %v78_v25 = vld [vmem:[#allocation2 + $0x30] sm:$0xff]  ;;  %v77_v35 = vld [vmem:[#allocation2 + $0x28] sm:$0xff] }
   0xa   :  { %3859 = vst [vmem:[#allocation9_spill] sm:$0xff] %v2833_v5  ;;  %v2851_v17 = vsub.f32 %v85_v2, %v2833_v5  ;;  %v2855_v19 = vsub.f32 %v84_v6, %v2835_v9  ;;  %v2858_v20 = vsub.f32 %v83_v7, %v2837_v10  ;;  %v2870_v24 = vand.u32 4294901760, %v80_v13  ;;  %v76_v40 = vld [vmem:[#allocation2 + $0x20] sm:$0xff]  ;;  %v75_v49 = vld [vmem:[#allocation2 + $0x18] sm:$0xff]  ;;  %v74_v53 = vld [vmem:[#allocation2 + $0x10] sm:$0xff]  ;;  %s2756_s27 = smov 121  }
   0xb   :  { %3860 = vst [vmem:[#allocation10_spill] sm:$0xff] %v2835_v9  ;;  %91 = vmatpush.msra.mxu2 %v2831_v4  ;;  %v2862_v21 = vand.u32 4294901760, %v2843_v14  ;;  %v2865_v22 = vand.u32 4294901760, %v2846_v15  ;;  %476 = vmatpush.msra.mxu1 %v2831_v4  ;;  %v2876_v27 = vand.u32 4294901760, %v79_v18  ;;  %v2882_v29 = vsub.f32 %v82_v8, %v2839_v11  ;;  %v2930_v47 = vld [vmem:[%s3735_s0] sm:$0xff]  ;;  %v73_v60 = vld [vmem:[#allocation2 + $0x8] sm:$0xff] }
   0xc   :  { %3861 = vst [vmem:[#allocation11_spill] sm:$0xff] %v2837_v10  ;;  %v2868_v23 = vand.u32 4294901760, %v2851_v17  ;;  %v2874_v26 = vand.u32 4294901760, %v2855_v19  ;;  %v2879_v28 = vand.u32 4294901760, %v2858_v20  ;;  %v2892_v33 = vsub.f32 %v81_v12, %v2848_v16  ;;  %v72_v2 = vld [vmem:[#allocation2] sm:$0xff]  ;;  %s2759_s28 = smov 7  }
   0xd   :  { %3862 = vst [vmem:[#allocation12_spill] sm:$0xff] %v2839_v11  ;;  %93 = vmatpush.msra.mxu2 %v2833_v5  ;;  %v156_v30 = vsub.f32 %v2843_v14, %v2862_v21  ;;  %v162_v31 = vsub.f32 %v2846_v15, %v2865_v22  ;;  %v2894_v34 = vand.u32 4294901760, %v78_v25  ;;  %395 = vmatpush.msra.mxu0 %v2862_v21  ;;  %v2906_v39 = vand.u32 4294901760, %v2882_v29  ;;  %s2760_s29 = smov 127   ;;  %s2761_s13 = smov 9  }
   0xe   :  { %3863 = vst [vmem:[#allocation13_spill] sm:$0xff] %v2843_v14  ;;  %v168_v32 = vsub.f32 %v2851_v17, %v2868_v23  ;;  %478 = vmatpush.msra.mxu1 %v2833_v5  ;;  %v174_v38 = vsub.f32 %v2855_v19, %v2874_v26  ;;  %v180_v41 = vsub.f32 %v2858_v20, %v2879_v28  ;;  %v2919_v44 = vand.u32 4294901760, %v77_v35 }
   0xf   :  { %3864 = vst [vmem:[#allocation14_spill] sm:$0xff] %v2846_v15  ;;  %95 = vmatpush.msra.mxu2 %v2835_v9  ;;  %v2899_v36 = vand.u32 4294901760, %v156_v30  ;;  %v2901_v37 = vand.u32 4294901760, %v162_v31  ;;  %v2911_v42 = vsub.f32 %v80_v13, %v2870_v24  ;;  %399 = vmatpush.msra.mxu0 %v2865_v22  ;;  %v2922_v45 = vand.u32 4294901760, %v2892_v33  ;;  %v3006_v30 = vld [vmem:[%s3735_s0 + $0x8] sm:$0xff] }
  0x10   :  { %3865 = vst [vmem:[#allocation15_spill] sm:$0xff] %v2848_v16  ;;  %480 = vmatpush.msra.mxu1 %v2835_v9  ;;  %v2917_v43 = vand.u32 4294901760, %v168_v32  ;;  %v2925_v46 = vsub.f32 %v79_v18, %v2876_v27  ;;  %v2932_v48 = vand.u32 4294901760, %v76_v40  ;;  %v2938_v50 = vand.u32 4294901760, %v174_v38 }
  0x11   :  { %3866 = vst [vmem:[#allocation16_spill] sm:$0xff] %v2851_v17  ;;  %97 = vmatpush.msra.mxu2 %v2837_v10  ;;  %158 = vmatpush.msra.mxu3 %v2899_v36  ;;  %v186_v51 = vsub.f32 %v2882_v29, %v2906_v39  ;;  %v2943_v52 = vand.u32 4294901760, %v2911_v42  ;;  %v2946_v54 = vsub.f32 %v78_v25, %v2894_v34  ;;  %v2948_v55 = vand.u32 4294901760, %v180_v41 }
  0x12   :  { %3867 = vst [vmem:[#allocation17_spill] sm:$0xff] %v2855_v19  ;;  %403 = vmatpush.msra.mxu0 %v2868_v23  ;;  %482 = vmatpush.msra.mxu1 %v2837_v10  ;;  %v2951_v56 = vand.u32 4294901760, %v2930_v47  ;;  %v192_v57 = vsub.f32 %v2892_v33, %v2922_v45  ;;  %v2959_v58 = vand.u32 4294901760, %v75_v49  ;;  %v2962_v59 = vand.u32 4294901760, %v2925_v46 }
  0x13   :  { %3868 = vst [vmem:[#allocation18_spill] sm:$0xff] %v2858_v20  ;;  %99 = vmatpush.msra.mxu2 %v2839_v11  ;;  %164 = vmatpush.msra.mxu3 %v2901_v37  ;;  %v2965_v61 = vsub.f32 %v77_v35, %v2919_v44  ;;  %v2967_v62 = vand.u32 4294901760, %v74_v53  ;;  %v2973_v63 = vand.u32 4294901760, %v186_v51  ;;  %v198_v0 = vsub.f32 %v2911_v42, %v2943_v52 }
  0x14   :  { %3869 = vst [vmem:[#allocation19_spill] sm:$0xff] %v2862_v21  ;;  %407 = vmatpush.msra.mxu0 %v2874_v26  ;;  %484 = vmatpush.msra.mxu1 %v2839_v11  ;;  %v2978_v1 = vand.u32 4294901760, %v2946_v54  ;;  %v2981_v6 = vsub.f32 %v76_v40, %v2932_v48  ;;  %v2983_v7 = vand.u32 4294901760, %v73_v60  ;;  %v2987_v8 = vsub.f32 %v2930_v47, %v2951_v56 }
  0x15   :  { %3870 = vst [vmem:[#allocation20_spill] sm:$0xff] %v2865_v22  ;;  %101 = vmatpush.msra.mxu2 %v2848_v16  ;;  %170 = vmatpush.msra.mxu3 %v2917_v43  ;;  %v2993_v12 = vand.u32 4294901760, %v192_v57  ;;  %v204_v13 = vsub.f32 %v2925_v46, %v2962_v59  ;;  %v2998_v18 = vand.u32 4294901760, %v2965_v61  ;;  %v3001_v25 = vsub.f32 %v75_v49, %v2959_v58 }
  0x16   :  { %3871 = vst [vmem:[#allocation21_spill] sm:$0xff] %v2868_v23  ;;  %411 = vmatpush.msra.mxu0 %v2879_v28  ;;  %486 = vmatpush.msra.mxu1 %v2848_v16  ;;  %v3008_v31 = vand.u32 4294901760, %v72_v2  ;;  %v3014_v32 = vand.u32 4294901760, %v198_v0  ;;  %v210_v35 = vsub.f32 %v2946_v54, %v2978_v1  ;;  %v3019_v38 = vand.u32 4294901760, %v2981_v6 }
  0x17   :  { %3872 = vst [vmem:[#allocation22_spill] sm:$0xff] %v2870_v24  ;;  %103 = vmatpush.msra.mxu2 %v2870_v24  ;;  %176 = vmatpush.msra.mxu3 %v2938_v50  ;;  %v3022_v40 = vsub.f32 %v74_v53, %v2967_v62  ;;  %v3026_v49 = vand.u32 4294901760, %v3006_v30  ;;  %v3032_v51 = vand.u32 4294901760, %v204_v13  ;;  %v216_v57 = vsub.f32 %v2965_v61, %v2998_v18 }
  0x18   :  { %3873 = vst [vmem:[#allocation23_spill] sm:$0xff] %v2874_v26  ;;  %415 = vmatpush.msra.mxu0 %v2906_v39  ;;  %488 = vmatpush.msra.mxu1 %v2870_v24  ;;  %v3037_v53 = vand.u32 4294901760, %v3001_v25  ;;  %v3040_v0 = vsub.f32 %v73_v60, %v2983_v7  ;;  %v3046_v41 = vand.u32 4294901760, %v210_v35  ;;  %v222_v13 = vsub.f32 %v2981_v6, %v3019_v38 }
  0x19   :  { %3874 = vst [vmem:[#allocation24_spill] sm:$0xff] %v2876_v27  ;;  %105 = vmatpush.msra.mxu2 %v2876_v27  ;;  %182 = vmatpush.msra.mxu3 %v2948_v55  ;;  %v3912_v60 = vand.u32 4294901760, %v2987_v8  ;;  %v3067_v35 = vand.u32 4294901760, %v216_v57 }
  0x1a   :  { %3875 = vst [vmem:[#allocation25_spill] sm:$0xff] %v2879_v28  ;;  %419 = vmatpush.msra.mxu0 %v2922_v45  ;;  %490 = vmatpush.msra.mxu1 %v2876_v27  ;;  %v3083_v57 = vand.u32 4294901760, %v222_v13 }
  0x1b   :  { %3876 = vst [vmem:[#allocation26_spill] sm:$0xff] %v2882_v29  ;;  %107 = vmatpush.msra.mxu2 %v2894_v34  ;;  %188 = vmatpush.msra.mxu3 %v2973_v63 }
  0x1c   :  { %3877 = vst [vmem:[#allocation27_spill] sm:$0xff] %v2892_v33  ;;  %423 = vmatpush.msra.mxu0 %v2943_v52  ;;  %492 = vmatpush.msra.mxu1 %v2894_v34 }
  0x1d   :  { %3878 = vst [vmem:[#allocation28_spill] sm:$0xff] %v2894_v34  ;;  %109 = vmatpush.msra.mxu2 %v2919_v44  ;;  %194 = vmatpush.msra.mxu3 %v2993_v12 }
  0x1e   :  { %3879 = vst [vmem:[#allocation29_spill] sm:$0xff] %v2906_v39  ;;  %427 = vmatpush.msra.mxu0 %v2962_v59  ;;  %494 = vmatpush.msra.mxu1 %v2919_v44  ;;  %v3072_v39 = vand.u32 4294901760, %v3040_v0 }
  0x1f   :  { %3880 = vst [vmem:[#allocation30_spill] sm:$0xff] %v2911_v42  ;;  %111 = vmatpush.msra.mxu2 %v2932_v48  ;;  %200 = vmatpush.msra.mxu3 %v3014_v32 }
  0x20   :  { %3881 = vst [vmem:[#allocation31_spill] sm:$0xff] %v2919_v44  ;;  %431 = vmatpush.msra.mxu0 %v2978_v1  ;;  %496 = vmatpush.msra.mxu1 %v2932_v48 }
  0x21   :  { %3882 = vst [vmem:[#allocation32_spill] sm:$0xff] %v2922_v45  ;;  %v3061_v45 = vsub.f32 %v3006_v30, %v3026_v49  ;;  %113 = vmatpush.msra.mxu2 %v2959_v58  ;;  %206 = vmatpush.msra.mxu3 %v3032_v51 }
  0x22   :  { %3883 = vst [vmem:[#allocation33_spill] sm:$0xff] %v2925_v46  ;;  %435 = vmatpush.msra.mxu0 %v2998_v18  ;;  %498 = vmatpush.msra.mxu1 %v2959_v58 }
  0x23   :  { %3884 = vst [vmem:[#allocation34_spill] sm:$0xff] %v2930_v47  ;;  %v3051_v47 = vand.u32 4294901760, %v3022_v40  ;;  %115 = vmatpush.msra.mxu2 %v2967_v62  ;;  %212 = vmatpush.msra.mxu3 %v3046_v41 }
  0x24   :  { %3885 = vst [vmem:[#allocation35_spill] sm:$0xff] %v2932_v48  ;;  %439 = vmatpush.msra.mxu0 %v3019_v38  ;;  %500 = vmatpush.msra.mxu1 %v2967_v62 }
  0x25   :  { %3886 = vst [vmem:[#allocation36_spill] sm:$0xff] %v2938_v50  ;;  %117 = vmatpush.msra.mxu2 %v2983_v7  ;;  %218 = vmatpush.msra.mxu3 %v3067_v35 }
  0x26   :  { %3887 = vst [vmem:[#allocation37_spill] sm:$0xff] %v2943_v52  ;;  %v3054_v52 = vsub.f32 %v72_v2, %v3008_v31  ;;  %v228_v2 = vsub.f32 %v3001_v25, %v3037_v53  ;;  %443 = vmatpush.msra.mxu0 %v3037_v53  ;;  %502 = vmatpush.msra.mxu1 %v2983_v7 }
  0x27   :  { %3888 = vst [vmem:[#allocation38_spill] sm:$0xff] %v2946_v54  ;;  %119 = vmatpush.msra.mxu2 %v3008_v31  ;;  %224 = vmatpush.msra.mxu3 %v3083_v57 }
  0x28   :  { %3889 = vst [vmem:[#allocation39_spill] sm:$0xff] %v2948_v55  ;;  %v3098_v13 = vand.u32 4294901760, %v228_v2  ;;  %v3920_v2 = vand.u32 4294901760, %v3061_v45  ;;  %447 = vmatpush.msra.mxu0 %v3051_v47  ;;  %504 = vmatpush.msra.mxu1 %v3008_v31 }
  0x29   :  { %3890 = vst [vmem:[#allocation40_spill] sm:$0xff] %v2959_v58  ;;  %268 = vmatpush.msrb.mxu2 %v2843_v14  ;;  %506 = vmatmul.f32.vlgmr.msra.gmra.mxu1 %v2951_v56 }
  0x2a   :  { %3891 = vst [vmem:[#allocation41_spill] sm:$0xff] %v2962_v59  ;;  %v123_v59 = vsub.f32 %v2987_v8, %v3912_v60  ;;  %v3077_v60 = vld [vmem:[%s3735_s0 + $0x10] sm:$0xff]  ;;  %230 = vmatpush.msra.mxu3 %v3098_v13  ;;  %451 = vmatpush.msra.mxu0 %v3072_v39 }
  0x2b   :  { %3892 = vst [vmem:[#allocation42_spill] sm:$0xff] %v2965_v61  ;;  %v3092_v23 = vand.u32 4294901760, %v3077_v60  ;;  %271 = vmatpush.msrb.mxu2 %v2846_v15 }
  0x2c   :  { %3893 = vst [vmem:[#allocation43_spill] sm:$0xff] %v2967_v62  ;;  %v124_v28 = vand.u32 4294901760, %v123_v59 }
  0x2d   :  { %3894 = vst [vmem:[#allocation44_spill] sm:$0xff] %v2973_v63  ;;  %v3115_v22 = vsub.f32 %v3077_v60, %v3092_v23  ;;  %274 = vmatpush.msrb.mxu2 %v2851_v17 }
  0x2e   :  { %3895 = vst [vmem:[#allocation45_spill] sm:$0xff] %v2978_v1  ;;  %v3088_v1 = vand.u32 4294901760, %v3054_v52  ;;  %125 = vmatmul.f32.vlgmr.msra.gmra.mxu2 %v124_v28  ;;  %v3125_v28 = vld [vmem:[%s3735_s0 + $0x18] sm:$0xff] }
  0x2f   :  { %3896 = vst [vmem:[#allocation46_spill] sm:$0xff] %v2981_v6  ;;  %277 = vmatpush.msrb.mxu2 %v2855_v19 }
  0x30   :  { %3897 = vst [vmem:[#allocation47_spill] sm:$0xff] %v2983_v7  ;;  %v246_v26 = vsub.f32 %v3054_v52, %v3088_v1  ;;  %455 = vmatpush.msra.mxu0 %v3088_v1 }
  0x31   :  { %3898 = vst [vmem:[#allocation48_spill] sm:$0xff] %v2993_v12  ;;  %457 = vmatmul.f32.vlgmr.msra.gmra.mxu0 %v2951_v56  ;;  %280 = vmatpush.msrb.mxu2 %v2858_v20 }
  0x32   :  { %3899 = vst [vmem:[#allocation49_spill] sm:$0xff] %v2998_v18  ;;  %v240_v18 = vsub.f32 %v3040_v0, %v3072_v39  ;;  %510 = vmatmul.f32.gmra.mxu1 %v3026_v49 }
  0x33   :  { %3900 = vst [vmem:[#allocation50_spill] sm:$0xff] %v3001_v25  ;;  %283 = vmatpush.msrb.mxu2 %v2882_v29 }
  0x34   :  { %3901 = vst [vmem:[#allocation51_spill] sm:$0xff] %v3006_v30  ;;  %v234_v30 = vsub.f32 %v3022_v40, %v3051_v47 }
  0x35   :  { %3902 = vst [vmem:[#allocation52_spill] sm:$0xff] %v3008_v31  ;;  %286 = vmatpush.msrb.mxu2 %v2892_v33 }
  0x36   :  { %3903 = vst [vmem:[#allocation53_spill] sm:$0xff] %v3014_v32  ;;  %v3106_v59 = vand.u32 4294901760, %v234_v30  ;;  %v3120_v30 = vand.u32 4294901760, %v240_v18  ;;  %v144_v18 = vand.u32 4294901760, %v3125_v28 }
  0x37   :  { %3904 = vst [vmem:[#allocation54_spill] sm:$0xff] %v3019_v38  ;;  %v131_v38 = vsub.f32 %v3061_v45, %v3920_v2  ;;  %v3131_v2 = vand.u32 4294901760, %v246_v26  ;;  %289 = vmatpush.msrb.mxu2 %v2911_v42 }
  0x38   :  { %3905 = vst [vmem:[#allocation55_spill] sm:$0xff] %v3022_v40  ;;  %236 = vmatpush.msra.mxu3 %v3106_v59 }
  0x39   :  { %3906 = vst [vmem:[#allocation56_spill] sm:$0xff] %v3032_v51  ;;  %461 = vmatmul.f32.gmra.mxu0 %v3026_v49  ;;  %292 = vmatpush.msrb.mxu2 %v2925_v46 }
  0x3a   :  { %3907 = vst [vmem:[#allocation57_spill] sm:$0xff] %v3037_v53  ;;  %242 = vmatpush.msra.mxu3 %v3120_v30  ;;  %514 = vmatmul.f32.gmra.mxu1 %v3092_v23 }
  0x3b   :  { %3908 = vst [vmem:[#allocation58_spill] sm:$0xff] %v3040_v0  ;;  %295 = vmatpush.msrb.mxu2 %v2946_v54 }
  0x3c   :  { %3909 = vst [vmem:[#allocation59_spill] sm:$0xff] %v3046_v41  ;;  %248 = vmatpush.msra.mxu3 %v3131_v2 }
  0x3d   :  { %3910 = vst [vmem:[#allocation60_spill] sm:$0xff] %v3051_v47  ;;  %v138_v47 = vand.u32 4294901760, %v3115_v22  ;;  %250 = vmatmul.f32.vlgmr.msra.gmra.mxu3 %v2951_v56  ;;  %298 = vmatpush.msrb.mxu2 %v2965_v61 }
  0x3e   :  { %3911 = vst [vmem:[#allocation61_spill] sm:$0xff] %v3054_v52  ;;  %336 = vmatpush.msrb.mxu3 %v2829_v3 }
  0x3f   :  { %3913 = vst [vmem:[#allocation62_spill] sm:$0xff] %v3067_v35  ;;  %v139_v26 = vsub.f32 %v3115_v22, %v138_v47  ;;  %301 = vmatpush.msrb.mxu2 %v2981_v6 }
  0x40   :  { %3914 = vst [vmem:[#allocation63_spill] sm:$0xff] %v3072_v39  ;;  %338 = vmatpush.msrb.mxu3 %v2831_v4 }
  0x41   :  { %3915 = vst [vmem:[#allocation64_spill] sm:$0xff] %v3077_v60  ;;  %v132_v60 = vand.u32 4294901760, %v131_v38  ;;  %v145_v38 = vsub.f32 %v3125_v28, %v144_v18  ;;  %465 = vmatmul.f32.gmra.mxu0 %v3092_v23  ;;  %304 = vmatpush.msrb.mxu2 %v3001_v25 }
  0x42   :  { %3916 = vst [vmem:[#allocation65_spill] sm:$0xff] %v3083_v57  ;;  %340 = vmatpush.msrb.mxu3 %v2833_v5  ;;  %518 = vmatmul.f32.gmra.mxu1 %v144_v18 }
  0x43   :  { %3917 = vst [vmem:[#allocation66_spill] sm:$0xff] %v3088_v1  ;;  %133 = vmatmul.f32.gmra.mxu2 %v132_v60  ;;  %v140_v1 = vand.u32 4294901760, %v139_v26  ;;  %v146_v39 = vand.u32 4294901760, %v145_v38 }
  0x44   :  { %3918 = vst [vmem:[#allocation67_spill] sm:$0xff] %v3098_v13  ;;  %342 = vmatpush.msrb.mxu3 %v2835_v9  ;;  %307 = vmatpush.msrb.mxu2 %v3022_v40 }
  0x45   :  { %3919 = vst [vmem:[#allocation68_spill] sm:$0xff] %v3106_v59  ;;  %254 = vmatmul.f32.gmra.mxu3 %v3026_v49  ;;  %v147_v56 = vsub.f32 %v145_v38, %v146_v39 }
  0x46   :  { %3921 = vst [vmem:[#allocation69_spill] sm:$0xff] %v3120_v30  ;;  %344 = vmatpush.msrb.mxu3 %v2837_v10  ;;  %310 = vmatpush.msrb.mxu2 %v3040_v0 }
  0x47   :  { %3922 = vst [vmem:[#allocation70_spill] sm:$0xff] %v3125_v28  ;;  %v148_v60 = vand.u32 4294901760, %v147_v56 }
  0x48   :  { %3923 = vst [vmem:[#allocation71_spill] sm:$0xff] %v3131_v2  ;;  %346 = vmatpush.msrb.mxu3 %v2839_v11  ;;  %313 = vmatpush.msrb.mxu2 %v3054_v52 }
  0x49   :  { %469 = vmatmul.f32.gmra.mxu0 %v144_v18 }
  0x4a   :  { %348 = vmatpush.msrb.mxu3 %v2848_v16 }
  0x4b   :  { %141 = vmatmul.f32.gmra.mxu2 %v140_v1  ;;  %v3925_v1 = vand.u32 4294901760, %v3061_v45 }
  0x4c   :  { %350 = vmatpush.msrb.mxu3 %v2870_v24 }
  0x4d   :  { %258 = vmatmul.f32.gmra.mxu3 %v3092_v23  ;;  %v3924_v23 = vand.u32 4294901760, %v2987_v8 }
  0x4e   :  { %352 = vmatpush.msrb.mxu3 %v2876_v27 }
  0x50   :  { %354 = vmatpush.msrb.mxu3 %v2894_v34 }
  0x52   :  { %356 = vmatpush.msrb.mxu3 %v2919_v44 }
  0x53   :  { %149 = vmatmul.f32.gmra.mxu2 %v148_v60 }
  0x54   :  { %358 = vmatpush.msrb.mxu3 %v2932_v48 }
  0x55   :  { %262 = vmatmul.f32.gmra.mxu3 %v144_v18 }
  0x56   :  { %360 = vmatpush.msrb.mxu3 %v2959_v58  ;;  %v68_v58 = vld [vmem:[%s3738_s3] sm:$0xff] }
  0x57   :  { %v524_v13 = vsel %vm522_vm0, %v68_v58, 0 }
  0x58   :  { %362 = vmatpush.msrb.mxu3 %v2967_v62 }
  0x5a   :  { %364 = vmatpush.msrb.mxu3 %v2983_v7 }
  0x5b   :  { %316 = vmatmul.f32.vlgmr.msrb.gmra.mxu2 %v2987_v8 }
  0x5c   :  { %366 = vmatpush.msrb.mxu3 %v3008_v31 }
  0x5d   :  { %370 = vmatmul.f32.vlgmr.msrb.gmra.mxu3 %v3924_v23 }
  0x63   :  { %321 = vmatmul.f32.gmra.mxu2 %v3061_v45 }
  0x65   :  { %376 = vmatmul.f32.gmra.mxu3 %v3925_v1 }
  0x6b   :  { %326 = vmatmul.f32.gmra.mxu2 %v3115_v22 }
  0x6d   :  { %382 = vmatmul.f32.gmra.mxu3 %v138_v47 }
  0x73   :  { %331 = vmatmul.f32.gmra.mxu2 %v145_v38 }
  0x75   :  { %388 = vmatmul.f32.gmra.mxu3 %v146_v39 }
  0xa6   :  { %v507_v8 = vpop.f32.mrf.mxu1 }
  0xae   :  { %v458_v7 = vpop.f32.mrf.mxu0 }
  0xaf   :  { %v511_v62 = vpop.f32.mrf.mxu1 }
  0xb1   :  { %v126_v49 = vpop.f32.mrf.mxu2 }
  0xb6   :  { %v462_v22 = vpop.f32.mrf.mxu0 }
  0xb7   :  { %v515_v59 = vpop.f32.mrf.mxu1 }
  0xbe   :  { %v466_v2 = vpop.f32.mrf.mxu0 }
  0xc0   :  { %v251_v26 = vpop.f32.mrf.mxu3 }
  0xc1   :  { %v252_v47 = vadd.f32 %v251_v26, %v126_v49 }
  0xc6   :  { %v134_v18 = vpop.f32.mrf.mxu2 }
  0xc8   :  { %v255_v60 = vpop.f32.mrf.mxu3 }
  0xc9   :  { %v256_v38 = vadd.f32 %v255_v60, %v134_v18 }
  0xce   :  { %v142_v56 = vpop.f32.mrf.mxu2 }
  0xd0   :  { %v259_v53 = vpop.f32.mrf.mxu3 }
  0xd1   :  { %v260_v39 = vadd.f32 %v259_v53, %v142_v56  ;;  %v3190_v53 = vand.u32 4294901760, %v524_v13 }
  0xd6   :  { %v150_v28 = vpop.f32.mrf.mxu2 }
  0xd8   :  { %v263_v21 = vpop.f32.mrf.mxu3 }
  0xd9   :  { %v264_v26 = vadd.f32 %v263_v21, %v150_v28  ;;  %v519_v21 = vpop.f32.mrf.mxu1 }
  0xde   :  { %v317_v31 = vpop.f32.mrf.mxu2 }
  0xdf   :  { %v318_v40 = vadd.f32 %v317_v31, %v252_v47  ;;  %v69_v31 = vld [vmem:[%s3738_s3 + $0x8] sm:$0xff] }
  0xe0   :  { %v371_v52 = vpop.f32.mrf.mxu3 }
  0xe1   :  { %v372_v44 = vadd.f32 %v371_v52, %v318_v40  ;;  %v3196_v52 = vsub.f32 %v524_v13, %v3190_v53 }
  0xe3   :  { %v459_v56 = vadd.f32 %v458_v7, %v372_v44  ;;  %v3204_v40 = vand.u32 4294901760, %v3196_v52 }
  0xe5   :  { %v508_v58 = vadd.f32 %v507_v8, %v459_v56  ;;  %v558_v8 = vsub.f32 %v3196_v52, %v3204_v40 }
  0xe6   :  { %v322_v23 = vpop.f32.mrf.mxu2 }
  0xe7   :  { %v323_v0 = vadd.f32 %v322_v23, %v256_v38  ;;  %v3224_v56 = vand.u32 4294901760, %v558_v8 }
  0xe8   :  { %v377_v45 = vpop.f32.mrf.mxu3 }
  0xe9   :  { %v378_v48 = vadd.f32 %v377_v45, %v323_v0 }
  0xeb   :  { %v463_v34 = vadd.f32 %v462_v22, %v378_v48 }
  0xed   :  { %v512_v23 = vadd.f32 %v511_v62, %v463_v34  ;;  %v3208_v62 = vand.u32 4294901760, %v508_v58 }
  0xee   :  { %v327_v1 = vpop.f32.mrf.mxu2 }
  0xef   :  { %v328_v30 = vadd.f32 %v327_v1, %v260_v39  ;;  %v470_v1 = vpop.f32.mrf.mxu0  ;;  %v3201_v44 = vand.u32 4294901760, %v512_v23  ;;  %v619_v38 = vsub.f32 %v508_v58, %v3208_v62 }
  0xf0   :  { %v383_v25 = vpop.f32.mrf.mxu3 }
  0xf1   :  { %v384_v6 = vadd.f32 %v383_v25, %v328_v30  ;;  %v527_v25 = vsel %vm522_vm0, %v69_v31, 0  ;;  %v70_v30 = vld [vmem:[%s3738_s3 + $0x10] sm:$0xff]  ;;  %v613_v28 = vsub.f32 %v512_v23, %v3201_v44 }
  0xf2   :  { %v3206_v34 = vand.u32 4294901760, %v527_v25 }
  0xf3   :  { %v467_v18 = vadd.f32 %v466_v2, %v384_v6 }
  0xf4   :  { %v3218_v22 = vsub.f32 %v527_v25, %v3206_v34 }
  0xf5   :  { %v516_v60 = vadd.f32 %v515_v59, %v467_v18  ;;  %v530_v18 = vsel %vm522_vm0, %v70_v30, 0 }
  0xf6   :  { %v332_v49 = vpop.f32.mrf.mxu2  ;;  %v3229_v31 = vand.u32 4294901760, %v530_v18 }
  0xf7   :  { %v333_v0 = vadd.f32 %v332_v49, %v264_v26  ;;  %v3198_v48 = vand.u32 4294901760, %v516_v60  ;;  %v614_v26 = vand.u32 4294901760, %v613_v28 }
  0xf8   :  { %v389_v45 = vpop.f32.mrf.mxu3 }
  0xf9   :  { %v390_v6 = vadd.f32 %v389_v45, %v333_v0  ;;  %v607_v13 = vsub.f32 %v516_v60, %v3198_v48  ;;  %v3227_v60 = vand.u32 4294901760, %v3218_v22  ;;  %v620_v45 = vand.u32 4294901760, %v619_v38 }
  0xfb   :  { %v471_v7 = vadd.f32 %v470_v1, %v390_v6  ;;  %v608_v39 = vand.u32 4294901760, %v607_v13  ;;  %v71_v1 = vld [vmem:[%s3738_s3 + $0x18] sm:$0xff]  ;;  %v615_v6 = vsub.f32 %v613_v28, %v614_v26  ;;  %v566_v25 = vsub.f32 %v3218_v22, %v3227_v60 }
  0xfd   :  { %v520_v59 = vadd.f32 %v519_v21, %v471_v7  ;;  %v609_v0 = vsub.f32 %v607_v13, %v608_v39  ;;  %v3242_v21 = vsub.f32 %v530_v18, %v3229_v31  ;;  %v616_v30 = vand.u32 4294901760, %v615_v6  ;;  %v3933_v6 = vld [vmem:[#allocation69_spill] sm:$0xff] }
  0xff   :  { %v547_v2 = vand.u32 4294901760, %v520_v59  ;;  %v610_v7 = vand.u32 4294901760, %v609_v0  ;;  %v3249_v8 = vand.u32 4294901760, %v3242_v21  ;;  %v3929_v0 = vld [vmem:[#allocation31_spill] sm:$0xff] }
 0x101   :  { %v601_v47 = vsub.f32 %v520_v59, %v547_v2  ;;  %548 = vmatpush.msra.mxu2 %v547_v2  ;;  %699 = vmatpush.msrb.mxu1 %v547_v2  ;;  %v533_v59 = vsel %vm522_vm0, %v71_v1, 0  ;;  %v3931_v1 = vld [vmem:[#allocation50_spill] sm:$0xff] }
 0x103   :  { %550 = vmatpush.msra.mxu2 %v3198_v48  ;;  %655 = vmatpush.msrb.mxu0 %v601_v47  ;;  %v602_v49 = vand.u32 4294901760, %v601_v47 }
 0x104   :  { %701 = vmatpush.msrb.mxu1 %v3198_v48 }
 0x105   :  { %552 = vmatpush.msra.mxu2 %v3201_v44  ;;  %658 = vmatpush.msrb.mxu0 %v607_v13  ;;  %v603_v23 = vsub.f32 %v601_v47, %v602_v49  ;;  %v621_v13 = vsub.f32 %v619_v38, %v620_v45  ;;  %v3252_v47 = vand.u32 4294901760, %v533_v59 }
 0x106   :  { %703 = vmatpush.msrb.mxu1 %v3201_v44 }
 0x107   :  { %554 = vmatpush.msra.mxu2 %v3208_v62  ;;  %661 = vmatpush.msrb.mxu0 %v613_v28  ;;  %v604_v58 = vand.u32 4294901760, %v603_v23  ;;  %v3246_v28 = vand.u32 4294901760, %v566_v25  ;;  %v622_v18 = vand.u32 4294901760, %v621_v13  ;;  %v3928_v23 = vld [vmem:[#allocation46_spill] sm:$0xff]  ;;  %v3934_v25 = vld [vmem:[#allocation55_spill] sm:$0xff] }
 0x108   :  { %705 = vmatpush.msrb.mxu1 %v3208_v62  ;;  %560 = vmatmul.f32.vlgmr.msra.gmra.mxu2 %v3224_v56  ;;  %v3936_v13 = vld [vmem:[#allocation71_spill] sm:$0xff] }
 0x109   :  { %746 = vmatpush.msrb.mxu2 %v602_v49  ;;  %605 = vmatpush.msra.mxu3 %v604_v58  ;;  %v3932_v58 = vld [vmem:[#allocation35_spill] sm:$0xff] }
 0x10a   :  { %664 = vmatpush.msrb.mxu0 %v619_v38  ;;  %709 = vmatmul.f32.vlgmr.msrb.gmra.mxu1 %v3204_v40  ;;  %v574_v38 = vsub.f32 %v3242_v21, %v3249_v8 }
 0x10b   :  { %750 = vmatpush.msrb.mxu2 %v608_v39  ;;  %611 = vmatpush.msra.mxu3 %v610_v7  ;;  %v3262_v39 = vsub.f32 %v533_v59, %v3252_v47  ;;  %v3935_v7 = vld [vmem:[#allocation40_spill] sm:$0xff]  ;;  %v3937_v59 = vld [vmem:[#allocation58_spill] sm:$0xff] }
 0x10c   :  { %667 = vmatmul.f32.vlgmr.msrb.gmra.mxu0 %v3196_v52  ;;  %895 = vmatpush.msra.mxu1 %v2899_v36  ;;  %v3269_v49 = vand.u32 4294901760, %v574_v38  ;;  %v3940_v38 = vld [vmem:[#allocation47_spill] sm:$0xff] }
 0x10d   :  { %754 = vmatpush.msrb.mxu2 %v614_v26  ;;  %617 = vmatpush.msra.mxu3 %v616_v30  ;;  %v3272_v26 = vand.u32 4294901760, %v3262_v39  ;;  %v3938_v30 = vld [vmem:[#allocation43_spill] sm:$0xff] }
 0x10e   :  { %901 = vmatpush.msra.mxu1 %v2901_v37  ;;  %826 = vmatpush.msra.mxu0 %v2829_v3 }
 0x10f   :  { %758 = vmatpush.msrb.mxu2 %v620_v45  ;;  %623 = vmatpush.msra.mxu3 %v622_v18  ;;  %v3930_v45 = vld [vmem:[#allocation68_spill] sm:$0xff]  ;;  %v3939_v18 = vld [vmem:[#allocation61_spill] sm:$0xff] }
 0x110   :  { %568 = vmatmul.f32.gmra.mxu2 %v3246_v28  ;;  %625 = vmatmul.f32.vlgmr.msra.gmra.mxu3 %v3190_v53 }
 0x111   :  { %789 = vmatpush.msrb.mxu3 %v547_v2  ;;  %1005 = vmatpush.msra.mxu2 %v2843_v14  ;;  %v3927_v2 = vld [vmem:[#allocation67_spill] sm:$0xff]  ;;  %v3957_v14 = vld [vmem:[#allocation66_spill] sm:$0xff] }
 0x112   :  { %715 = vmatmul.f32.gmra.mxu1 %v3227_v60  ;;  %828 = vmatpush.msra.mxu0 %v2831_v4 }
 0x113   :  { %791 = vmatpush.msrb.mxu3 %v3198_v48  ;;  %907 = vmatpush.msra.mxu1 %v2917_v43  ;;  %v582_v48 = vsub.f32 %v3262_v39, %v3272_v26 }
 0x114   :  { %672 = vmatmul.f32.gmra.mxu0 %v3218_v22  ;;  %1008 = vmatpush.msra.mxu2 %v2846_v15  ;;  %v3956_v15 = vld [vmem:[#allocation63_spill] sm:$0xff] }
 0x115   :  { %793 = vmatpush.msrb.mxu3 %v3201_v44  ;;  %913 = vmatpush.msra.mxu1 %v2938_v50  ;;  %v3292_v44 = vand.u32 4294901760, %v582_v48  ;;  %v3941_v48 = vld [vmem:[#allocation52_spill] sm:$0xff] }
 0x116   :  { %1011 = vmatpush.msra.mxu2 %v2851_v17  ;;  %830 = vmatpush.msra.mxu0 %v2833_v5  ;;  %v3955_v17 = vld [vmem:[#allocation60_spill] sm:$0xff] }
 0x117   :  { %795 = vmatpush.msrb.mxu3 %v3208_v62  ;;  %919 = vmatpush.msra.mxu1 %v2948_v55  ;;  %v3926_v62 = vld [vmem:[#allocation28_spill] sm:$0xff] }
 0x118   :  { %576 = vmatmul.f32.gmra.mxu2 %v3269_v49  ;;  %629 = vmatmul.f32.gmra.mxu3 %v3206_v34 }
 0x119   :  { %1073 = vmatpush.msra.mxu3 %v2829_v3  ;;  %1014 = vmatpush.msra.mxu2 %v2855_v19  ;;  %v3954_v19 = vld [vmem:[#allocation57_spill] sm:$0xff] }
 0x11a   :  { %721 = vmatmul.f32.gmra.mxu1 %v3249_v8  ;;  %832 = vmatpush.msra.mxu0 %v2835_v9 }
 0x11b   :  { %1075 = vmatpush.msra.mxu3 %v2831_v4  ;;  %925 = vmatpush.msra.mxu1 %v2973_v63 }
 0x11c   :  { %677 = vmatmul.f32.gmra.mxu0 %v3242_v21  ;;  %1017 = vmatpush.msra.mxu2 %v2858_v20  ;;  %v3953_v20 = vld [vmem:[#allocation54_spill] sm:$0xff] }
 0x11d   :  { %1077 = vmatpush.msra.mxu3 %v2833_v5  ;;  %931 = vmatpush.msra.mxu1 %v2993_v12 }
 0x11e   :  { %1020 = vmatpush.msra.mxu2 %v2882_v29  ;;  %834 = vmatpush.msra.mxu0 %v2837_v10  ;;  %v3952_v29 = vld [vmem:[#allocation49_spill] sm:$0xff] }
 0x11f   :  { %1079 = vmatpush.msra.mxu3 %v2835_v9  ;;  %937 = vmatpush.msra.mxu1 %v3014_v32 }
 0x120   :  { %584 = vmatmul.f32.gmra.mxu2 %v3292_v44  ;;  %633 = vmatmul.f32.gmra.mxu3 %v3229_v31 }
 0x121   :  { %1081 = vmatpush.msra.mxu3 %v2837_v10  ;;  %1023 = vmatpush.msra.mxu2 %v2892_v33  ;;  %v3951_v33 = vld [vmem:[#allocation45_spill] sm:$0xff] }
 0x122   :  { %727 = vmatmul.f32.gmra.mxu1 %v3272_v26  ;;  %836 = vmatpush.msra.mxu0 %v2839_v11 }
 0x123   :  { %1083 = vmatpush.msra.mxu3 %v2839_v11  ;;  %943 = vmatpush.msra.mxu1 %v3032_v51 }
 0x124   :  { %682 = vmatmul.f32.gmra.mxu0 %v3262_v39  ;;  %1026 = vmatpush.msra.mxu2 %v2911_v42  ;;  %v3950_v42 = vld [vmem:[#allocation41_spill] sm:$0xff] }
 0x125   :  { %1085 = vmatpush.msra.mxu3 %v2848_v16  ;;  %949 = vmatpush.msra.mxu1 %v3046_v41 }
 0x126   :  { %1029 = vmatpush.msra.mxu2 %v2925_v46  ;;  %838 = vmatpush.msra.mxu0 %v2848_v16  ;;  %v3949_v46 = vld [vmem:[#allocation37_spill] sm:$0xff] }
 0x127   :  { %1087 = vmatpush.msra.mxu3 %v2870_v24  ;;  %955 = vmatpush.msra.mxu1 %v3067_v35 }
 0x128   :  { %637 = vmatmul.f32.gmra.mxu3 %v3252_v47  ;;  %760 = vmatmul.f32.vlgmr.msrb.gmra.mxu2 %v3190_v53 }
 0x129   :  { %1032 = vmatpush.msra.mxu2 %v2946_v54  ;;  %1089 = vmatpush.msra.mxu3 %v2876_v27  ;;  %v3948_v54 = vld [vmem:[#allocation32_spill] sm:$0xff] }
 0x12a   :  { %840 = vmatpush.msra.mxu0 %v2870_v24  ;;  %961 = vmatpush.msra.mxu1 %v3083_v57  ;;  %v3958_v57 = vld [vmem:[#allocation34_spill] sm:$0xff] }
 0x12b   :  { %1035 = vmatpush.msra.mxu2 %v2965_v61  ;;  %1091 = vmatpush.msra.mxu3 %v3926_v62  ;;  %v3947_v61 = vld [vmem:[#allocation29_spill] sm:$0xff] }
 0x12c   :  { %842 = vmatpush.msra.mxu0 %v2876_v27  ;;  %967 = vmatpush.msra.mxu1 %v3927_v2 }
 0x12d   :  { %1038 = vmatpush.msra.mxu2 %v3928_v23  ;;  %1093 = vmatpush.msra.mxu3 %v3929_v0  ;;  %v3946_v23 = vld [vmem:[#allocation25_spill] sm:$0xff] }
 0x12e   :  { %844 = vmatpush.msra.mxu0 %v3926_v62  ;;  %973 = vmatpush.msra.mxu1 %v3930_v45 }
 0x12f   :  { %1041 = vmatpush.msra.mxu2 %v3931_v1  ;;  %1095 = vmatpush.msra.mxu3 %v3932_v58  ;;  %v3945_v1 = vld [vmem:[#allocation23_spill] sm:$0xff] }
 0x130   :  { %764 = vmatmul.f32.gmra.mxu2 %v3206_v34  ;;  %797 = vmatmul.f32.vlgmr.msrb.gmra.mxu3 %v3190_v53 }
 0x131   :  { %846 = vmatpush.msra.mxu0 %v3929_v0  ;;  %979 = vmatpush.msra.mxu1 %v3933_v6 }
 0x132   :  { %1044 = vmatpush.msra.mxu2 %v3934_v25  ;;  %1097 = vmatpush.msra.mxu3 %v3935_v7  ;;  %v3944_v25 = vld [vmem:[#allocation21_spill] sm:$0xff] }
 0x133   :  { %848 = vmatpush.msra.mxu0 %v3932_v58  ;;  %985 = vmatpush.msra.mxu1 %v3936_v13 }
 0x134   :  { %1047 = vmatpush.msra.mxu2 %v3937_v59  ;;  %1099 = vmatpush.msra.mxu3 %v3938_v30  ;;  %v3943_v59 = vld [vmem:[#allocation20_spill] sm:$0xff] }
 0x135   :  { %850 = vmatpush.msra.mxu0 %v3935_v7  ;;  %1211 = vmatpush.msrb.mxu1 %v2829_v3 }
 0x136   :  { %1050 = vmatpush.msra.mxu2 %v3939_v18  ;;  %1101 = vmatpush.msra.mxu3 %v3940_v38  ;;  %v3942_v18 = vld [vmem:[#allocation19_spill] sm:$0xff] }
 0x137   :  { %852 = vmatpush.msra.mxu0 %v3938_v30  ;;  %1213 = vmatpush.msrb.mxu1 %v2831_v4 }
 0x138   :  { %768 = vmatmul.f32.gmra.mxu2 %v3229_v31  ;;  %801 = vmatmul.f32.gmra.mxu3 %v3206_v34 }
 0x139   :  { %1103 = vmatpush.msra.mxu3 %v3941_v48  ;;  %854 = vmatpush.msra.mxu0 %v3940_v38 }
 0x13a   :  { %1215 = vmatpush.msrb.mxu1 %v2833_v5 }
 0x13b   :  { %856 = vmatpush.msra.mxu0 %v3941_v48 }
 0x13c   :  { %1217 = vmatpush.msrb.mxu1 %v2835_v9 }
 0x13d   :  { %1132 = vmatpush.msrb.mxu0 %v3942_v18 }
 0x13e   :  { %1219 = vmatpush.msrb.mxu1 %v2837_v10 }
 0x13f   :  { %1136 = vmatpush.msrb.mxu0 %v3943_v59 }
 0x140   :  { %772 = vmatmul.f32.gmra.mxu2 %v3252_v47  ;;  %805 = vmatmul.f32.gmra.mxu3 %v3229_v31 }
 0x141   :  { %1221 = vmatpush.msrb.mxu1 %v2839_v11  ;;  %1140 = vmatpush.msrb.mxu0 %v3944_v25 }
 0x143   :  { %1223 = vmatpush.msrb.mxu1 %v2848_v16  ;;  %1144 = vmatpush.msrb.mxu0 %v3945_v1 }
 0x145   :  { %1225 = vmatpush.msrb.mxu1 %v2870_v24  ;;  %1148 = vmatpush.msrb.mxu0 %v3946_v23 }
 0x147   :  { %1227 = vmatpush.msrb.mxu1 %v2876_v27  ;;  %1152 = vmatpush.msrb.mxu0 %v3947_v61 }
 0x148   :  { %809 = vmatmul.f32.gmra.mxu3 %v3252_v47 }
 0x149   :  { %1229 = vmatpush.msrb.mxu1 %v3926_v62  ;;  %1156 = vmatpush.msrb.mxu0 %v3948_v54 }
 0x14b   :  { %1231 = vmatpush.msrb.mxu1 %v3929_v0  ;;  %1160 = vmatpush.msrb.mxu0 %v3949_v46 }
 0x14d   :  { %1233 = vmatpush.msrb.mxu1 %v3932_v58  ;;  %1164 = vmatpush.msrb.mxu0 %v3950_v42 }
 0x14f   :  { %1235 = vmatpush.msrb.mxu1 %v3935_v7  ;;  %1168 = vmatpush.msrb.mxu0 %v3951_v33 }
 0x151   :  { %1237 = vmatpush.msrb.mxu1 %v3938_v30  ;;  %1172 = vmatpush.msrb.mxu0 %v3952_v29 }
 0x153   :  { %1239 = vmatpush.msrb.mxu1 %v3940_v38  ;;  %1176 = vmatpush.msrb.mxu0 %v3953_v20 }
 0x155   :  { %1241 = vmatpush.msrb.mxu1 %v3941_v48  ;;  %1180 = vmatpush.msrb.mxu0 %v3954_v19 }
 0x157   :  { %1184 = vmatpush.msrb.mxu0 %v3955_v17 }
 0x159   :  { %1188 = vmatpush.msrb.mxu0 %v3956_v15 }
 0x15b   :  { %1192 = vmatpush.msrb.mxu0 %v3957_v14 }
 0x187   :  { %v710_v25 = vpop.f32.mrf.mxu1 }
 0x189   :  { %v668_v29 = vpop.f32.mrf.mxu0 }
 0x18b   :  { %v561_v42 = vpop.f32.mrf.mxu2 }
 0x18f   :  { %v716_v13 = vpop.f32.mrf.mxu1 }
 0x191   :  { %v673_v19 = vpop.f32.mrf.mxu0 }
 0x193   :  { %v569_v33 = vpop.f32.mrf.mxu2  ;;  %v626_v46 = vpop.f32.mrf.mxu3 }
 0x194   :  { %v627_v20 = vadd.f32 %v626_v46, %v561_v42 }
 0x196   :  { %v669_v48 = vadd.f32 %v668_v29, %v627_v20 }
 0x197   :  { %v722_v29 = vpop.f32.mrf.mxu1 }
 0x198   :  { %v711_v38 = vadd.f32 %v710_v25, %v669_v48 }
 0x199   :  { %v678_v58 = vpop.f32.mrf.mxu0 }
 0x19b   :  { %v577_v54 = vpop.f32.mrf.mxu2  ;;  %v630_v61 = vpop.f32.mrf.mxu3 }
 0x19c   :  { %v631_v17 = vadd.f32 %v630_v61, %v569_v33 }
 0x19e   :  { %v674_v6 = vadd.f32 %v673_v19, %v631_v17 }
 0x19f   :  { %v728_v48 = vpop.f32.mrf.mxu1 }
 0x1a0   :  { %v717_v2 = vadd.f32 %v716_v13, %v674_v6 }
 0x1a3   :  { %v585_v23 = vpop.f32.mrf.mxu2  ;;  %v634_v1 = vpop.f32.mrf.mxu3 }
 0x1a4   :  { %v635_v0 = vadd.f32 %v634_v1, %v577_v54  ;;  %v3959_v54 = vld [vmem:[#allocation51_spill] sm:$0xff] }
 0x1a6   :  { %v679_v33 = vadd.f32 %v678_v58, %v635_v0 }
 0x1ab   :  { %v638_v59 = vpop.f32.mrf.mxu3  ;;  %v761_v18 = vpop.f32.mrf.mxu2 }
 0x1ac   :  { %v762_v15 = vadd.f32 %v761_v18, %v711_v38  ;;  %v639_v19 = vadd.f32 %v638_v59, %v585_v23 }
 0x1b3   :  { %v765_v30 = vpop.f32.mrf.mxu2  ;;  %v798_v14 = vpop.f32.mrf.mxu3 }
 0x1b4   :  { %v799_v7 = vadd.f32 %v798_v14, %v762_v15  ;;  %v766_v42 = vadd.f32 %v765_v30, %v717_v2  ;;  %v723_v15 = vadd.f32 %v722_v29, %v679_v33  ;;  %v3960_v29 = vld [vmem:[#allocation64_spill] sm:$0xff] }
 0x1b6   :  { %v813_v45 = vmul.f32 0.0078125, %v799_v7 }
 0x1b8   :  { %v3389_v62 = vsub.f32 %v3958_v57, %v813_v45  ;;  %v683_v45 = vpop.f32.mrf.mxu0 }
 0x1b9   :  { %v684_v7 = vadd.f32 %v683_v45, %v639_v19 }
 0x1ba   :  { %v821_v20 = vmul.f32 %v3389_v62, %v3389_v62 }
 0x1bb   :  { %v802_v46 = vpop.f32.mrf.mxu3  ;;  %v769_v18 = vpop.f32.mrf.mxu2 }
 0x1bc   :  { %v803_v61 = vadd.f32 %v802_v46, %v766_v42  ;;  %v3393_v25 = vand.u32 4294901760, %v821_v20  ;;  %v770_v1 = vadd.f32 %v769_v18, %v723_v15 }
 0x1be   :  { %v814_v17 = vmul.f32 0.0078125, %v803_v61  ;;  %987 = vmatmul.f32.vlgmr.msra.gmra.mxu1 %v3393_v25  ;;  %v858_v14 = vsub.f32 %v821_v20, %v3393_v25  ;;  %v729_v20 = vadd.f32 %v728_v48, %v684_v7 }
 0x1c0   :  { %v3398_v57 = vsub.f32 %v3959_v54, %v814_v17  ;;  %1053 = vmatmul.f32.vlgmr.msra.gmra.mxu2 %v858_v14  ;;  %v859_v2 = vand.u32 4294901760, %v858_v14 }
 0x1c2   :  { %v822_v0 = vmul.f32 %v3398_v57, %v3398_v57  ;;  %1107 = vmatmul.f32.vlgmr.msra.gmra.mxu3 %v859_v2  ;;  %v860_v58 = vsub.f32 %v858_v14, %v859_v2 }
 0x1c3   :  { %v806_v6 = vpop.f32.mrf.mxu3  ;;  %v773_v59 = vpop.f32.mrf.mxu2 }
 0x1c4   :  { %v807_v13 = vadd.f32 %v806_v6, %v770_v1  ;;  %v861_v30 = vand.u32 4294901760, %v860_v58  ;;  %v865_v38 = vand.u32 4294901760, %v822_v0  ;;  %v774_v61 = vadd.f32 %v773_v59, %v729_v20  ;;  %v3961_v1 = vld [vmem:[#allocation70_spill] sm:$0xff]  ;;  %v3416_v20 = vld [vmem:[%s3736_s1] sm:$0xff] }
 0x1c6   :  { %v815_v42 = vmul.f32 0.0078125, %v807_v13  ;;  %862 = vmatmul.f32.vlgmr.msra.gmra.mxu0 %v861_v30  ;;  %991 = vmatmul.f32.gmra.mxu1 %v865_v38  ;;  %v866_v23 = vsub.f32 %v822_v0, %v865_v38 }
 0x1c8   :  { %v3403_v46 = vsub.f32 %v3960_v29, %v815_v42  ;;  %1058 = vmatmul.f32.gmra.mxu2 %v866_v23  ;;  %v867_v33 = vand.u32 4294901760, %v866_v23  ;;  %v3421_v29 = vld [vmem:[%s3736_s1 + $0x8] sm:$0xff] }
 0x1ca   :  { %v823_v18 = vmul.f32 %v3403_v46, %v3403_v46  ;;  %1113 = vmatmul.f32.gmra.mxu3 %v867_v33  ;;  %v868_v17 = vsub.f32 %v866_v23, %v867_v33  ;;  %v3426_v33 = vld [vmem:[%s3736_s1 + $0x10] sm:$0xff] }
 0x1cb   :  { %v810_v14 = vpop.f32.mrf.mxu3 }
 0x1cc   :  { %v811_v15 = vadd.f32 %v810_v14, %v774_v61  ;;  %v869_v19 = vand.u32 4294901760, %v868_v17  ;;  %v873_v54 = vand.u32 4294901760, %v823_v18  ;;  %v3431_v61 = vld [vmem:[%s3736_s1 + $0x18] sm:$0xff]  ;;  %v1703_v17 = vsel %vm1701_vm1, %v3421_v29, 0.0  ;;  %s2757_s1 = smov 119  }
 0x1cd   :  { %v1705_v14 = vsel %vm1701_vm1, %v3426_v33, 0.0 }
 0x1ce   :  { %v816_v2 = vmul.f32 0.0078125, %v811_v15  ;;  %870 = vmatmul.f32.gmra.mxu0 %v869_v19  ;;  %995 = vmatmul.f32.gmra.mxu1 %v873_v54  ;;  %v874_v45 = vsub.f32 %v823_v18, %v873_v54  ;;  %v1702_v18 = vsel %vm1701_vm1, %v3416_v20, 0.0  ;;  %v1707_v19 = vsel %vm1701_vm1, %v3431_v61, 0.0 }
 0x1cf   :  { %v1704_v15 = vadd.f32 %v1703_v17, %v1702_v18 }
 0x1d0   :  { %v3408_v0 = vsub.f32 %v3961_v1, %v816_v2  ;;  %1063 = vmatmul.f32.gmra.mxu2 %v874_v45  ;;  %v875_v58 = vand.u32 4294901760, %v874_v45 }
 0x1d1   :  { %v1706_v2 = vadd.f32 %v1705_v14, %v1704_v15 }
 0x1d2   :  { %v824_v6 = vmul.f32 %v3408_v0, %v3408_v0  ;;  %1119 = vmatmul.f32.gmra.mxu3 %v875_v58  ;;  %v876_v7 = vsub.f32 %v874_v45, %v875_v58 }
 0x1d3   :  { %v1708_v45 = vadd.f32 %v1707_v19, %v1706_v2 }
 0x1d4   :  { %v877_v13 = vand.u32 4294901760, %v876_v7  ;;  %v881_v30 = vand.u32 4294901760, %v824_v6 }
 0x1d5   :  { %1709 = vadd.xlane.f32.xlu0 %v1708_v45 }
 0x1d6   :  { %878 = vmatmul.f32.gmra.mxu0 %v877_v13  ;;  %999 = vmatmul.f32.gmra.mxu1 %v881_v30  ;;  %v882_v48 = vsub.f32 %v824_v6, %v881_v30 }
 0x1d8   :  { %1068 = vmatmul.f32.gmra.mxu2 %v882_v48  ;;  %v883_v42 = vand.u32 4294901760, %v882_v48 }
 0x1da   :  { %1125 = vmatmul.f32.gmra.mxu3 %v883_v42  ;;  %v884_v23 = vsub.f32 %v882_v48, %v883_v42 }
 0x1dc   :  { %v885_v59 = vand.u32 4294901760, %v884_v23 }
 0x1de   :  { %886 = vmatmul.f32.gmra.mxu0 %v885_v59  ;;  %1243 = vmatmul.f32.vlgmr.msrb.gmra.mxu1 %v3393_v25 }
 0x1e6   :  { %1194 = vmatmul.f32.vlgmr.msrb.gmra.mxu0 %v3393_v25  ;;  %1247 = vmatmul.f32.gmra.mxu1 %v865_v38 }
 0x1ee   :  { %1198 = vmatmul.f32.gmra.mxu0 %v865_v38  ;;  %1251 = vmatmul.f32.gmra.mxu1 %v873_v54 }
 0x1f6   :  { %1202 = vmatmul.f32.gmra.mxu0 %v873_v54  ;;  %1255 = vmatmul.f32.gmra.mxu1 %v881_v30 }
 0x1fe   :  { %1206 = vmatmul.f32.gmra.mxu0 %v881_v30 }
 0x23b   :  { %v988_v1 = vpop.f32.mrf.mxu1 }
 0x243   :  { %v863_v58 = vpop.f32.mrf.mxu0  ;;  %v992_v6 = vpop.f32.mrf.mxu1 }
 0x244   :  { %v1054_v23 = vpop.f32.mrf.mxu2  ;;  %v989_v30 = vadd.f32 %v988_v1, %v863_v58 }
 0x245   :  { %v1108_v59 = vpop.f32.mrf.mxu3 }
 0x246   :  { %v1055_v32 = vadd.f32 %v1054_v23, %v989_v30 }
 0x248   :  { %v1710_v35 = vpop.xlane.xlu0 %1709  ;;  %v1109_v50 = vadd.f32 %v1108_v59, %v1055_v32 }
 0x249   :  { %v1711_v27 = vrot.slane %v1710_v35, 4 }
 0x24b   :  { %v871_v7 = vpop.f32.mrf.mxu0  ;;  %v996_v13 = vpop.f32.mrf.mxu1  ;;  %v1712_v16 = vadd.f32 %v1711_v27, %v1710_v35 }
 0x24c   :  { %v1059_v14 = vpop.f32.mrf.mxu2  ;;  %v993_v38 = vadd.f32 %v992_v6, %v871_v7 }
 0x24d   :  { %v1114_v15 = vpop.f32.mrf.mxu3  ;;  %v1713_v11 = vrot.slane %v1712_v16, 2 }
 0x24e   :  { %v1060_v41 = vadd.f32 %v1059_v14, %v993_v38 }
 0x24f   :  { %v1714_v5 = vadd.f32 %v1713_v11, %v1712_v16 }
 0x250   :  { %v1115_v12 = vadd.f32 %v1114_v15, %v1060_v41 }
 0x253   :  { %v879_v48 = vpop.f32.mrf.mxu0  ;;  %v1000_v42 = vpop.f32.mrf.mxu1 }
 0x254   :  { %v997_v2 = vadd.f32 %v996_v13, %v879_v48  ;;  %v1064_v54 = vpop.f32.mrf.mxu2  ;;  %v1715_v48 = vrot.slane %v1714_v5, 1 }
 0x255   :  { %v1120_v51 = vpop.f32.mrf.mxu3 }
 0x256   :  { %v1065_v24 = vadd.f32 %v1064_v54, %v997_v2  ;;  %v1716_v14 = vadd.f32 %v1715_v48, %v1714_v5 }
 0x258   :  { %v1121_v10 = vadd.f32 %v1120_v51, %v1065_v24  ;;  %2641 = vpush %v1716_v14 }
 0x25b   :  { %v887_v18 = vpop.f32.mrf.mxu0  ;;  %v1244_v17 = vpop.f32.mrf.mxu1 }
 0x25c   :  { %v1001_v63 = vadd.f32 %v1000_v42, %v887_v18  ;;  %v1069_v13 = vpop.f32.mrf.mxu2 }
 0x25d   :  { %v1126_v2 = vpop.f32.mrf.mxu3 }
 0x25e   :  { %v1070_v1 = vadd.f32 %v1069_v13, %v1001_v63 }
 0x260   :  { %v1127_v27 = vadd.f32 %v1126_v2, %v1070_v1 }
 0x263   :  { %v1195_v25 = vpop.f32.mrf.mxu0  ;;  %v1248_v19 = vpop.f32.mrf.mxu1 }
 0x264   :  { %v1196_v58 = vadd.f32 %v1195_v25, %v1109_v50 }
 0x266   :  { %v1245_v35 = vadd.f32 %v1244_v17, %v1196_v58 }
 0x268   :  { %v1277_v11 = vand.u32 4294901760, %v1245_v35 }
 0x26b   :  { %v1199_v45 = vpop.f32.mrf.mxu0  ;;  %v1252_v9 = vpop.f32.mrf.mxu1 }
 0x26c   :  { %v1200_v6 = vadd.f32 %v1199_v45, %v1115_v12 }
 0x26e   :  { %v1249_v38 = vadd.f32 %v1248_v19, %v1200_v6 }
 0x270   :  { %v1275_v51 = vand.u32 4294901760, %v1249_v38 }
 0x273   :  { %v1203_v55 = vpop.f32.mrf.mxu0  ;;  %v1256_v23 = vpop.f32.mrf.mxu1 }
 0x274   :  { %v1204_v7 = vadd.f32 %v1203_v55, %v1121_v10  ;;  %v1337_v55 = vsub.f32 %v1249_v38, %v1275_v51 }
 0x276   :  { %v1253_v4 = vadd.f32 %v1252_v9, %v1204_v7  ;;  %v1343_v9 = vsub.f32 %v1245_v35, %v1277_v11  ;;  %v1338_v63 = vand.u32 4294901760, %v1337_v55 }
 0x278   :  { %v1273_v41 = vand.u32 4294901760, %v1253_v4  ;;  %v1344_v17 = vand.u32 4294901760, %v1343_v9  ;;  %v1339_v25 = vsub.f32 %v1337_v55, %v1338_v63 }
 0x27a   :  { %v1331_v12 = vsub.f32 %v1253_v4, %v1273_v41  ;;  %v1345_v19 = vsub.f32 %v1343_v9, %v1344_v17  ;;  %v1340_v54 = vand.u32 4294901760, %v1339_v25 }
 0x27b   :  { %v1207_v24 = vpop.f32.mrf.mxu0 }
 0x27c   :  { %v1208_v42 = vadd.f32 %v1207_v24, %v1127_v27  ;;  %v1332_v5 = vand.u32 4294901760, %v1331_v12  ;;  %v1346_v45 = vand.u32 4294901760, %v1345_v19 }
 0x27e   :  { %v1257_v16 = vadd.f32 %v1256_v23, %v1208_v42  ;;  %v1333_v18 = vsub.f32 %v1331_v12, %v1332_v5 }
 0x280   :  { %v1271_v10 = vand.u32 4294901760, %v1257_v16  ;;  %v1334_v15 = vand.u32 4294901760, %v1333_v18 }
 0x282   :  { %v1325_v32 = vsub.f32 %v1257_v16, %v1271_v10  ;;  %1272 = vmatpush.msrb.mxu2 %v1271_v10  ;;  %1423 = vmatpush.msra.mxu1 %v1271_v10 }
 0x284   :  { %1274 = vmatpush.msrb.mxu2 %v1273_v41  ;;  %1379 = vmatpush.msra.mxu0 %v1325_v32  ;;  %v1326_v50 = vand.u32 4294901760, %v1325_v32 }
 0x285   :  { %1425 = vmatpush.msra.mxu1 %v1273_v41 }
 0x286   :  { %1276 = vmatpush.msrb.mxu2 %v1275_v51  ;;  %1382 = vmatpush.msra.mxu0 %v1331_v12  ;;  %v1327_v59 = vsub.f32 %v1325_v32, %v1326_v50 }
 0x287   :  { %1427 = vmatpush.msra.mxu1 %v1275_v51 }
 0x288   :  { %1278 = vmatpush.msrb.mxu2 %v1277_v11  ;;  %1385 = vmatpush.msra.mxu0 %v1337_v55  ;;  %v1328_v4 = vand.u32 4294901760, %v1327_v59 }
 0x289   :  { %1429 = vmatpush.msra.mxu1 %v1277_v11  ;;  %1284 = vmatmul.f32.vlgmr.msrb.gmra.mxu2 %v3224_v56  ;;  %s2642_s12 = spop %2641 }
 0x28a   :  { %1470 = vmatpush.msra.mxu2 %v1326_v50  ;;  %1329 = vmatpush.msrb.mxu3 %v1328_v4  ;;  %v1718_v56 = vstv %s2642_s12 }
 0x28b   :  { %1388 = vmatpush.msra.mxu0 %v1343_v9  ;;  %1433 = vmatmul.f32.vlgmr.msra.gmra.mxu1 %v3204_v40  ;;  %v67_v40 = vld [vmem:[%s3737_s2 + $0x18] sm:$0xff]  ;;  %2659 = vrcp.f32 %v1718_v56  ;;  %vm1724_vm2 = vweird.f32 %v1718_v56 }
 0x28c   :  { %1474 = vmatpush.msra.mxu2 %v1332_v5  ;;  %1335 = vmatpush.msrb.mxu3 %v1334_v15 }
 0x28d   :  { %1391 = vmatmul.f32.vlgmr.msra.gmra.mxu0 %v3196_v52  ;;  %v2754_v52 = vmov 0  }
 0x28e   :  { %1478 = vmatpush.msra.mxu2 %v1338_v63  ;;  %1341 = vmatpush.msrb.mxu3 %v1340_v54 }
 0x28f   :  { %2656 = vset.pattern.permute.xlu1 %v2754_v52  ;;  %2657 = vset.pattern.permute.xlu2 %v2754_v52 }
 0x290   :  { %1482 = vmatpush.msra.mxu2 %v1344_v17  ;;  %1347 = vmatpush.msrb.mxu3 %v1346_v45 }
 0x291   :  { %1292 = vmatmul.f32.gmra.mxu2 %v3246_v28  ;;  %1349 = vmatmul.f32.vlgmr.msrb.gmra.mxu3 %v3190_v53  ;;  %v2660_v28 = vpop.eup %2659 }
 0x292   :  { %1513 = vmatpush.msra.mxu3 %v1271_v10  ;;  %1670 = vperm.xlu1 %2656, %v3431_v61   ;;  %vm1725_vm3 = vweird.f32 %v2660_v28 }
 0x293   :  { %1439 = vmatmul.f32.gmra.mxu1 %v3227_v60  ;;  %1660 = vperm.xlu2 %2657, %v3421_v29   ;;  %v64_v60 = vld [vmem:[%s3737_s2] sm:$0xff]  ;;  %vm1726_vm4 = vmor %vm1724_vm2, %vm1725_vm3 }
 0x294   :  { %1515 = vmatpush.msra.mxu3 %v1273_v41  ;;  %2655 = vset.pattern.permute.xlu0 %v2754_v52 }
 0x295   :  { %1396 = vmatmul.f32.gmra.mxu0 %v3218_v22  ;;  %1665 = vperm.xlu0 %2655, %v3426_v33   ;;  %v66_v22 = vld [vmem:[%s3737_s2 + $0x10] sm:$0xff] }
 0x296   :  { %1517 = vmatpush.msra.mxu3 %v1275_v51 }
 0x298   :  { %1519 = vmatpush.msra.mxu3 %v1277_v11 }
 0x299   :  { %1300 = vmatmul.f32.gmra.mxu2 %v3269_v49  ;;  %1353 = vmatmul.f32.gmra.mxu3 %v3206_v34 }
 0x29a   :  { %1655 = vperm.xlu1 %2656, %v3416_v20  }
 0x29b   :  { %1445 = vmatmul.f32.gmra.mxu1 %v3249_v8  ;;  %1689 = vperm.xlu2 %2657, %v66_v22   ;;  %v1720_v8 = vmul.f32 %v2660_v28, %v1718_v56 }
 0x29d   :  { %1401 = vmatmul.f32.gmra.mxu0 %v3242_v21  ;;  %v65_v21 = vld [vmem:[%s3737_s2 + $0x8] sm:$0xff]  ;;  %v1721_v49 = vsub.f32 1.0, %v1720_v8 }
 0x2a1   :  { %1308 = vmatmul.f32.gmra.mxu2 %v3292_v44  ;;  %1357 = vmatmul.f32.gmra.mxu3 %v3229_v31  ;;  %v1722_v44 = vmul.f32 %v2660_v28, %v1721_v49 }
 0x2a2   :  { %1694 = vperm.xlu1 %2656, %v67_v40  }
 0x2a3   :  { %1451 = vmatmul.f32.gmra.mxu1 %v3272_v26  ;;  %1679 = vperm.xlu2 %2657, %v64_v60   ;;  %v1728_v26 = vand.u32 2147483647, %v1718_v56  ;;  %v1723_v6 = vadd.f32 %v2660_v28, %v1722_v44 }
 0x2a5   :  { %1406 = vmatmul.f32.gmra.mxu0 %v3262_v39  ;;  %v1730_v39 = vand.u32 2147483648, %v1718_v56  ;;  %vm1729_vm5 = vcmp.eq.f32.partialorder %v1728_v26, 8.507059e+37  ;;  %v1727_v7 = vsel %vm1726_vm4, %v2660_v28, %v1723_v6 }
 0x2a7   :  { %v1731_v30 = vor.u32 1.1754944e-38, %v1730_v39 }
 0x2a9   :  { %1361 = vmatmul.f32.gmra.mxu3 %v3252_v47  ;;  %1484 = vmatmul.f32.vlgmr.msra.gmra.mxu2 %v3190_v53 }
 0x2aa   :  { %1684 = vperm.xlu1 %2656, %v65_v21  }
 0x2b1   :  { %1488 = vmatmul.f32.gmra.mxu2 %v3206_v34  ;;  %1521 = vmatmul.f32.vlgmr.msra.gmra.mxu3 %v3190_v53  ;;  %v1732_v53 = vsel %vm1729_vm5, %v1731_v30, %v1727_v7 }
 0x2b2   :  { %v1736_v13 = vmul.f32 %v1732_v53, %v3431_v61  ;;  %v1735_v48 = vmul.f32 %v1732_v53, %v3426_v33  ;;  %v1734_v1 = vmul.f32 %v1732_v53, %v3421_v29  ;;  %v1733_v58 = vmul.f32 %v1732_v53, %v3416_v20 }
 0x2b4   :  { %1754 = vperm.xlu1 %2656, %v1736_v13   ;;  %1749 = vperm.xlu2 %2657, %v1735_v48  }
 0x2b9   :  { %1492 = vmatmul.f32.gmra.mxu2 %v3229_v31  ;;  %1525 = vmatmul.f32.gmra.mxu3 %v3206_v34 }
 0x2bc   :  { %1744 = vperm.xlu1 %2656, %v1734_v1   ;;  %1739 = vperm.xlu2 %2657, %v1733_v58  }
 0x2c1   :  { %1496 = vmatmul.f32.gmra.mxu2 %v3252_v47  ;;  %1529 = vmatmul.f32.gmra.mxu3 %v3229_v31 }
 0x2c9   :  { %1533 = vmatmul.f32.gmra.mxu3 %v3252_v47 }
 0x304   :  { %v3482_v60 = vpop.permute.xlu1 %1670 }
 0x308   :  { %v1434_v41 = vpop.f32.mrf.mxu1 }
 0x30a   :  { %v1392_v33 = vpop.f32.mrf.mxu0 }
 0x30c   :  { %v1285_v34 = vpop.f32.mrf.mxu2 }
 0x310   :  { %v1440_v11 = vpop.f32.mrf.mxu1 }
 0x312   :  { %v1397_v29 = vpop.f32.mrf.mxu0 }
 0x314   :  { %v1293_v14 = vpop.f32.mrf.mxu2  ;;  %v1350_v38 = vpop.f32.mrf.mxu3 }
 0x315   :  { %v1351_v24 = vadd.f32 %v1350_v38, %v1285_v34 }
 0x317   :  { %v1393_v42 = vadd.f32 %v1392_v33, %v1351_v24 }
 0x318   :  { %v1446_v59 = vpop.f32.mrf.mxu1 }
 0x319   :  { %v1435_v23 = vadd.f32 %v1434_v41, %v1393_v42 }
 0x31a   :  { %v1402_v9 = vpop.f32.mrf.mxu0 }
 0x31c   :  { %v1301_v61 = vpop.f32.mrf.mxu2  ;;  %v1354_v2 = vpop.f32.mrf.mxu3 }
 0x31d   :  { %v1355_v20 = vadd.f32 %v1354_v2, %v1293_v14  ;;  %v3484_v2 = vpop.permute.xlu2 %1660 }
 0x31f   :  { %v1398_v10 = vadd.f32 %v1397_v29, %v1355_v20 }
 0x320   :  { %v1452_v49 = vpop.f32.mrf.mxu1 }
 0x321   :  { %v1441_v5 = vadd.f32 %v1440_v11, %v1398_v10 }
 0x322   :  { %v1407_v40 = vpop.f32.mrf.mxu0 }
 0x324   :  { %v1309_v27 = vpop.f32.mrf.mxu2  ;;  %v1358_v35 = vpop.f32.mrf.mxu3 }
 0x325   :  { %v1359_v50 = vadd.f32 %v1358_v35, %v1301_v61  ;;  %v3486_v35 = vpop.permute.xlu1 %1655 }
 0x327   :  { %v1403_v17 = vadd.f32 %v1402_v9, %v1359_v50 }
 0x329   :  { %v1447_v45 = vadd.f32 %v1446_v59, %v1403_v17 }
 0x32c   :  { %v1362_v51 = vpop.f32.mrf.mxu3  ;;  %v1485_v31 = vpop.f32.mrf.mxu2 }
 0x32d   :  { %v1486_v16 = vadd.f32 %v1485_v31, %v1435_v23  ;;  %v1363_v52 = vadd.f32 %v1362_v51, %v1309_v27 }
 0x32f   :  { %v1408_v8 = vadd.f32 %v1407_v40, %v1363_v52 }
 0x331   :  { %v1453_v13 = vadd.f32 %v1452_v49, %v1408_v8 }
 0x334   :  { %v1489_v12 = vpop.f32.mrf.mxu2  ;;  %v1522_v47 = vpop.f32.mrf.mxu3 }
 0x335   :  { %v1523_v55 = vadd.f32 %v1522_v47, %v1486_v16  ;;  %v1490_v63 = vadd.f32 %v1489_v12, %v1441_v5 }
 0x337   :  { %v1537_v32 = vmul.f32 0.007874016, %v1523_v55 }
 0x339   :  { %2661 = vrsqrt.f32 %v1537_v32  ;;  %vm1548_vm6 = vcmp.eq.f32.partialorder %v1537_v32, inf  ;;  %v1551_v58 = vand.u32 2147483648, %v1537_v32  ;;  %vm1550_vm7 = vcmp.eq.f32.partialorder %v1537_v32, 0.0 }
 0x33c   :  { %v1526_v18 = vpop.f32.mrf.mxu3  ;;  %v1493_v25 = vpop.f32.mrf.mxu2 }
 0x33d   :  { %v1527_v4 = vadd.f32 %v1526_v18, %v1490_v63  ;;  %v1494_v56 = vadd.f32 %v1493_v25, %v1447_v45  ;;  %v3494_v63 = vpop.permute.xlu1 %1694 }
 0x33f   :  { %v2662_v15 = vpop.eup %2661  ;;  %v1538_v19 = vmul.f32 0.007874016, %v1527_v4 }
 0x340   :  { %v1542_v54 = vmul.f32 %v2662_v15, %v1537_v32 }
 0x341   :  { %2663 = vrsqrt.f32 %v1538_v19  ;;  %vm1560_vm8 = vcmp.eq.f32.partialorder %v1538_v19, inf  ;;  %v1563_v11 = vand.u32 2147483648, %v1538_v19  ;;  %vm1562_vm9 = vcmp.eq.f32.partialorder %v1538_v19, 0.0 }
 0x342   :  { %v1543_v22 = vmul.f32 %v2662_v15, %v1542_v54 }
 0x344   :  { %v1544_v21 = vmul.f32 0.5, %v1543_v22  ;;  %v1530_v28 = vpop.f32.mrf.mxu3  ;;  %v1497_v53 = vpop.f32.mrf.mxu2 }
 0x345   :  { %v1531_v39 = vadd.f32 %v1530_v28, %v1494_v56  ;;  %v1498_v34 = vadd.f32 %v1497_v53, %v1453_v13 }
 0x346   :  { %v1545_v26 = vsub.f32 1.5, %v1544_v21 }
 0x347   :  { %v2664_v44 = vpop.eup %2663  ;;  %v1539_v30 = vmul.f32 0.007874016, %v1531_v39 }
 0x348   :  { %v1546_v6 = vmul.f32 %v2662_v15, %v1545_v26  ;;  %v1554_v7 = vmul.f32 %v2664_v44, %v1538_v19 }
 0x349   :  { %2665 = vrsqrt.f32 %v1539_v30  ;;  %vm1572_vm10 = vcmp.eq.f32.partialorder %v1539_v30, inf  ;;  %vm1574_vm11 = vcmp.eq.f32.partialorder %v1539_v30, 0.0 }
 0x34a   :  { %v1547_v48 = vmul.f32 %v1546_v6, %v1537_v32  ;;  %v1555_v1 = vmul.f32 %v2664_v44, %v1554_v7 }
 0x34c   :  { %v1549_v14 = vsel %vm1548_vm6, %v1537_v32, %v1547_v48  ;;  %v1556_v38 = vmul.f32 0.5, %v1555_v1  ;;  %v1534_v61 = vpop.f32.mrf.mxu3  ;;  %v3491_v32 = vpop.permute.xlu2 %1689 }
 0x34d   :  { %v1552_v33 = vsel %vm1550_vm7, %v1551_v58, %v1549_v14  ;;  %v1535_v27 = vadd.f32 %v1534_v61, %v1498_v34 }
 0x34e   :  { %v3488_v41 = vadd.f32 1e-10, %v1552_v33  ;;  %v1557_v24 = vsub.f32 1.5, %v1556_v38 }
 0x34f   :  { %v2666_v51 = vpop.eup %2665  ;;  %v1540_v31 = vmul.f32 0.007874016, %v1535_v27 }
 0x350   :  { %2667 = vrcp.f32 %v3488_v41  ;;  %v1558_v42 = vmul.f32 %v2664_v44, %v1557_v24  ;;  %v1566_v29 = vmul.f32 %v2666_v51, %v1539_v30  ;;  %vm1598_vm13 = vweird.f32 %v3488_v41  ;;  %v1685_v44 = vpop.permute.xlu1 %1684 }
 0x351   :  { %2669 = vrsqrt.f32 %v1540_v31  ;;  %v1604_v39 = vand.u32 2147483648, %v3488_v41  ;;  %v1602_v26 = vand.u32 2147483647, %v3488_v41  ;;  %vm1584_vm14 = vcmp.eq.f32.partialorder %v1540_v31, inf }
 0x352   :  { %v1559_v23 = vmul.f32 %v1558_v42, %v1538_v19  ;;  %v1567_v20 = vmul.f32 %v2666_v51, %v1566_v29  ;;  %v1587_v48 = vand.u32 2147483648, %v1540_v31  ;;  %vm1586_vm0 = vcmp.eq.f32.partialorder %v1540_v31, 0.0 }
 0x353   :  { %v1605_v14 = vor.u32 1.1754944e-38, %v1604_v39  ;;  %vm1603_vm2 = vcmp.eq.f32.partialorder %v1602_v26, 8.507059e+37 }
 0x354   :  { %v1568_v16 = vmul.f32 0.5, %v1567_v20  ;;  %v1561_v12 = vsel %vm1560_vm8, %v1538_v19, %v1559_v23  ;;  %v1575_v19 = vand.u32 2147483648, %v1539_v30  ;;  %v1680_v49 = vpop.permute.xlu2 %1679 }
 0x355   :  { %v1564_v10 = vsel %vm1562_vm9, %v1563_v11, %v1561_v12 }
 0x356   :  { %v2668_v47 = vpop.eup %2667  ;;  %v1569_v5 = vsub.f32 1.5, %v1568_v16  ;;  %v1590_v50 = vadd.f32 1e-10, %v1564_v10 }
 0x357   :  { %v2670_v55 = vpop.eup %2669  ;;  %v1594_v9 = vmul.f32 %v2668_v47, %v3488_v41  ;;  %vm1599_vm12 = vweird.f32 %v2668_v47 }
 0x358   :  { %v1578_v59 = vmul.f32 %v2670_v55, %v1540_v31  ;;  %v1570_v17 = vmul.f32 %v2666_v51, %v1569_v5  ;;  %2671 = vrcp.f32 %v1590_v50  ;;  %vm3499_vm15 = vmor %vm1598_vm13, %vm1599_vm12  ;;  %v1617_v53 = vand.u32 2147483647, %v1590_v50  ;;  %v1755_v16 = vpop.permute.xlu1 %1754 }
 0x359   :  { %v1595_v18 = vsub.f32 1.0, %v1594_v9  ;;  %v1619_v13 = vand.u32 2147483648, %v1590_v50  ;;  %vm1613_vm3 = vweird.f32 %v1590_v50 }
 0x35a   :  { %v1579_v4 = vmul.f32 %v2670_v55, %v1578_v59  ;;  %v1571_v25 = vmul.f32 %v1570_v17, %v1539_v30  ;;  %vm1618_vm5 = vcmp.eq.f32.partialorder %v1617_v53, 8.507059e+37 }
 0x35b   :  { %v1596_v15 = vmul.f32 %v2668_v47, %v1595_v18  ;;  %v1620_v24 = vor.u32 1.1754944e-38, %v1619_v13 }
 0x35c   :  { %v1580_v54 = vmul.f32 0.5, %v1579_v4  ;;  %v1573_v45 = vsel %vm1572_vm10, %v1539_v30, %v1571_v25  ;;  %v1750_v20 = vpop.permute.xlu2 %1749 }
 0x35d   :  { %v1576_v40 = vsel %vm1574_vm11, %v1575_v19, %v1573_v45  ;;  %v1597_v21 = vadd.f32 %v2668_v47, %v1596_v15  ;;  %v1666_v15 = vpop.permute.xlu0 %1665 }
 0x35e   :  { %v1581_v52 = vsub.f32 1.5, %v1580_v54  ;;  %v2672_v22 = vpop.eup %2671  ;;  %v1591_v56 = vadd.f32 1e-10, %v1576_v40 }
 0x35f   :  { %v1609_v28 = vmul.f32 %v2672_v22, %v1590_v50  ;;  %v1601_v1 = vsel %vm3499_vm15, %v2668_v47, %v1597_v21  ;;  %vm1614_vm1 = vweird.f32 %v2672_v22 }
 0x360   :  { %v1582_v8 = vmul.f32 %v2670_v55, %v1581_v52  ;;  %2673 = vrcp.f32 %v1591_v56  ;;  %v1606_v41 = vsel %vm1603_vm2, %v1605_v14, %v1601_v1  ;;  %vm1615_vm4 = vmor %vm1613_vm3, %vm1614_vm1  ;;  %v1634_v12 = vand.u32 2147483648, %v1591_v56  ;;  %v1745_v21 = vpop.permute.xlu1 %1744 }
 0x361   :  { %v1610_v6 = vsub.f32 1.0, %v1609_v28  ;;  %v1607_v23 = vmul.f32 %v1606_v41, %v3389_v62  ;;  %v1632_v10 = vand.u32 2147483647, %v1591_v56  ;;  %vm1628_vm7 = vweird.f32 %v1591_v56 }
 0x362   :  { %v1583_v7 = vmul.f32 %v1582_v8, %v1540_v31  ;;  %v1635_v18 = vor.u32 1.1754944e-38, %v1634_v12  ;;  %vm1779_vm2 = vcmask 130048   ;;  %v3973_v12 = vld [vmem:[#allocation53_spill] sm:$0xff]  ;;  %vm1938_vm3 = vcmask 1043456  }
 0x363   :  { %v1611_v58 = vmul.f32 %v2672_v22, %v1610_v6  ;;  %v1673_v9 = vmul.f32 %v3486_v35, %v1607_v23  ;;  %vm1633_vm9 = vcmp.eq.f32.partialorder %v1632_v10, 8.507059e+37  ;;  %v3966_v23 = vld [vmem:[#allocation9_spill] sm:$0xff]  ;;  %v3976_v10 = vld [vmem:[#allocation22_spill] sm:$0xff] }
 0x364   :  { %v1585_v34 = vsel %vm1584_vm14, %v1540_v31, %v1583_v7  ;;  %v1740_v52 = vpop.permute.xlu2 %1739  ;;  %v2695_v7 = vld [vmem:[%s3735_s0] sm:$0xff] }
 0x365   :  { %v1588_v38 = vsel %vm1586_vm0, %v1587_v48, %v1585_v34  ;;  %v1612_v61 = vadd.f32 %v2672_v22, %v1611_v58  ;;  %v2698_v58 = vld [vmem:[%s3735_s0 + $0x18] sm:$0xff] }
 0x366   :  { %v1592_v33 = vadd.f32 1e-10, %v1588_v38  ;;  %v2674_v27 = vpop.eup %2673 }
 0x367   :  { %v1616_v51 = vsel %vm1615_vm4, %v2672_v22, %v1612_v61  ;;  %v1624_v29 = vmul.f32 %v2674_v27, %v1591_v56  ;;  %vm1629_vm6 = vweird.f32 %v2674_v27  ;;  %vm1931_vm4 = vcmask 64512  }
 0x368   :  { %2675 = vrcp.f32 %v1592_v33  ;;  %v1621_v42 = vsel %vm1618_vm5, %v1620_v24, %v1616_v51  ;;  %vm1630_vm8 = vmor %vm1628_vm7, %vm1629_vm6  ;;  %v1647_v4 = vand.u32 2147483647, %v1592_v33  ;;  %v1649_v25 = vand.u32 2147483648, %v1592_v33  ;;  %v1777_v51 = vld [vmem:[%s3741_s6] sm:$0xf] }
 0x369   :  { %v1622_v31 = vmul.f32 %v1621_v42, %v3398_v57  ;;  %v1625_v11 = vsub.f32 1.0, %v1624_v29  ;;  %v1697_v57 = vadd.f32 %v1680_v49, %v1673_v9  ;;  %vm1643_vm11 = vweird.f32 %v1592_v33  ;;  %v3964_v42 = vld [vmem:[#allocation8_spill] sm:$0xff] }
 0x36a   :  { %v1650_v56 = vor.u32 1.1754944e-38, %v1649_v25  ;;  %vm1648_vm13 = vcmp.eq.f32.partialorder %v1647_v4, 8.507059e+37  ;;  %v3965_v29 = vld [vmem:[#allocation36_spill] sm:$0xff]  ;;  %v3987_v25 = vld [vmem:[#allocation69_spill] sm:$0xff]  ;;  %vm1893_vm5 = vcmask 654336  }
 0x36b   :  { %v1626_v47 = vmul.f32 %v2674_v27, %v1625_v11  ;;  %v1674_v5 = vmul.f32 %v3484_v2, %v1622_v31  ;;  %v1757_v22 = vmul.f32 %v1740_v52, %v1697_v57  ;;  %v3969_v31 = vld [vmem:[#allocation44_spill] sm:$0xff]  ;;  %v3970_v11 = vld [vmem:[#allocation11_spill] sm:$0xff] }
 0x36c   :  { %v3978_v9 = vld [vmem:[#allocation24_spill] sm:$0xff] }
 0x36d   :  { %v1627_v59 = vadd.f32 %v2674_v27, %v1626_v47  ;;  %v1698_v19 = vadd.f32 %v1685_v44, %v1674_v5  ;;  %vm1761_vm14 = vcmp.ge.f32.partialorder %v1757_v22, 0.0  ;;  %v3975_v47 = vld [vmem:[#allocation56_spill] sm:$0xff]  ;;  %v3979_v5 = vld [vmem:[#allocation62_spill] sm:$0xff]  ;;  %v3996_v22 = vld [vmem:[#allocation25_spill] sm:$0xff] }
 0x36e   :  { %v2676_v55 = vpop.eup %2675  ;;  %v1765_v30 = vsel %vm1761_vm14, %v2695_v7, 0.0  ;;  %v3985_v57 = vld [vmem:[#allocation68_spill] sm:$0xff] }
 0x36f   :  { %v1639_v50 = vmul.f32 %v2676_v55, %v1592_v33  ;;  %v1631_v17 = vsel %vm1630_vm8, %v2674_v27, %v1627_v59  ;;  %vm1644_vm10 = vweird.f32 %v2676_v55  ;;  %v1758_v8 = vmul.f32 %v1745_v21, %v1698_v19  ;;  %v3981_v59 = vld [vmem:[#allocation65_spill] sm:$0xff]  ;;  %v3986_v4 = vld [vmem:[#allocation40_spill] sm:$0xff]  ;;  %v3990_v19 = vld [vmem:[#allocation47_spill] sm:$0xff] }
 0x370   :  { %v1636_v54 = vsel %vm1633_vm9, %v1635_v18, %v1631_v17  ;;  %vm1645_vm12 = vmor %vm1643_vm11, %vm1644_vm10  ;;  %v1769_v48 = vsub.f32 %v2695_v7, %v1765_v30  ;;  %v3982_v18 = vld [vmem:[#allocation31_spill] sm:$0xff]  ;;  %v3993_v52 = vld [vmem:[#allocation20_spill] sm:$0xff] }
 0x371   :  { %v1640_v62 = vsub.f32 1.0, %v1639_v50  ;;  %v1637_v35 = vmul.f32 %v1636_v54, %v3403_v46  ;;  %vm1762_vm15 = vcmp.ge.f32.partialorder %v1758_v8, 0.0  ;;  %v3980_v50 = vld [vmem:[#allocation28_spill] sm:$0xff]  ;;  %v3984_v17 = vld [vmem:[#allocation35_spill] sm:$0xff]  ;;  %v4000_v8 = vld [vmem:[#allocation41_spill] sm:$0xff] }
 0x372   :  { %v3989_v54 = vld [vmem:[#allocation71_spill] sm:$0xff]  ;;  %v3998_v21 = vld [vmem:[#allocation32_spill] sm:$0xff]  ;;  %v4007_v7 = vld [vmem:[#allocation66_spill] sm:$0xff] }
 0x373   :  { %v1641_v45 = vmul.f32 %v2676_v55, %v1640_v62  ;;  %v1675_v40 = vmul.f32 %v1666_v15, %v1637_v35  ;;  %v3983_v62 = vld [vmem:[#allocation67_spill] sm:$0xff] }
 0x374   :  { %v3988_v15 = vld [vmem:[#allocation43_spill] sm:$0xff] }
 0x375   :  { %v1642_v2 = vadd.f32 %v2676_v55, %v1641_v45  ;;  %v1699_v39 = vadd.f32 %v3491_v32, %v1675_v40  ;;  %v2696_v32 = vld [vmem:[%s3735_s0 + $0x8] sm:$0xff]  ;;  %v3991_v45 = vld [vmem:[#allocation52_spill] sm:$0xff]  ;;  %v3992_v35 = vld [vmem:[#allocation19_spill] sm:$0xff] }
 0x376   :  { %v1766_v53 = vsel %vm1762_vm15, %v2696_v32, 0.0  ;;  %v3995_v40 = vld [vmem:[#allocation23_spill] sm:$0xff] }
 0x377   :  { %v1646_v28 = vsel %vm1645_vm12, %v2676_v55, %v1642_v2  ;;  %v1759_v44 = vmul.f32 %v1750_v20, %v1699_v39  ;;  %v1770_v1 = vsub.f32 %v2696_v32, %v1766_v53  ;;  %v3968_v20 = vld [vmem:[#allocation10_spill] sm:$0xff]  ;;  %v3977_v55 = vld [vmem:[#allocation59_spill] sm:$0xff]  ;;  %v3994_v2 = vld [vmem:[#allocation21_spill] sm:$0xff] }
 0x378   :  { %v1651_v49 = vsel %vm1648_vm13, %v1650_v56, %v1646_v28  ;;  %v3997_v56 = vld [vmem:[#allocation29_spill] sm:$0xff] }
 0x379   :  { %v1652_v26 = vmul.f32 %v1651_v49, %v3408_v0  ;;  %vm1763_vm0 = vcmp.ge.f32.partialorder %v1759_v44, 0.0  ;;  %v2697_v0 = vld [vmem:[%s3735_s0 + $0x10] sm:$0xff]  ;;  %v3999_v28 = vld [vmem:[#allocation37_spill] sm:$0xff] }
 0x37a   :  { %v1767_v13 = vsel %vm1763_vm0, %v2697_v0, 0.0  ;;  %v4001_v39 = vld [vmem:[#allocation45_spill] sm:$0xff] }
 0x37b   :  { %v1676_v46 = vmul.f32 %v3482_v60, %v1652_v26  ;;  %v1775_v61 = vadd.f32 %v1769_v48, %v1767_v13  ;;  %v4002_v49 = vld [vmem:[#allocation49_spill] sm:$0xff]  ;;  %v4003_v26 = vld [vmem:[#allocation54_spill] sm:$0xff] }
 0x37c   :  { %v4004_v44 = vld [vmem:[#allocation57_spill] sm:$0xff] }
 0x37d   :  { %v1700_v6 = vadd.f32 %v3494_v63, %v1676_v46  ;;  %v1771_v63 = vsub.f32 %v2697_v0, %v1767_v13  ;;  %v4005_v46 = vld [vmem:[#allocation60_spill] sm:$0xff]  ;;  %v1862_v13 = vld [vmem:[%s3744_s9 + $0x18] sm:$0xff]  ;;  %v1860_v48 = vld [vmem:[%s3744_s9 + $0x8] sm:$0xff] }
 0x37e   :  { %v1859_v0 = vld [vmem:[%s3744_s9] sm:$0xff] }
 0x37f   :  { %v1760_v60 = vmul.f32 %v1755_v16, %v1700_v6  ;;  %v1773_v27 = vadd.f32 %v1771_v63, %v1765_v30  ;;  %v3972_v16 = vld [vmem:[#allocation12_spill] sm:$0xff]  ;;  %v4006_v6 = vld [vmem:[#allocation63_spill] sm:$0xff] }
 0x380   :  { %v1796_v30 = vld [vmem:[%s3742_s7] sm:$0xf]  ;;  %s2758_s7 = smov 1  }
 0x381   :  { %vm1764_vm1 = vcmp.ge.f32.partialorder %v1760_v60, 0.0  ;;  %v1861_v60 = vld [vmem:[%s3744_s9 + $0x10] sm:$0xff] }
 0x382   :  { %v1768_v34 = vsel %vm1764_vm1, %v2698_v58, 0.0 }
 0x383   :  { %v1772_v14 = vsub.f32 %v2698_v58, %v1768_v34  ;;  %v1776_v38 = vadd.f32 %v1770_v1, %v1768_v34  ;;  %v2658_v1 = vld [vmem:[%s3740_s5 + $0x8] ss:$0 sm:$0xff] }
 0x385   :  { %v1774_v33 = vadd.f32 %v1772_v14, %v1766_v53  ;;  %v1797_v41 = vpack.c.bf16 %v1776_v38, %v1775_v61  ;;  %v1814_v14 = vld [vmem:[%s3740_s5] sm:$0xff] }
 0x386   :  { %v1844_v38 = vperm.slane %v1814_v14, 7  ;;  %v1840_v61 = vperm.slane %v1814_v14, 6 }
 0x387   :  { %1808 = vmatpush.bf16.msrb.mxu1 %v1797_v41  ;;  %v1778_v24 = vpack.c.bf16 %v1774_v33, %v1773_v27  ;;  %v1836_v33 = vperm.slane %v1814_v14, 5 }
 0x389   :  { %1790 = vmatpush.bf16.msrb.mxu0 %v1778_v24 }
 0x38a   :  { %2621 = vmatmul.msk.bf16.vlgmr.msrb.gmra.mxu1 %vm1779_vm2, %v1796_v30  ;;  %v4011_v30 = vld [vmem:[#allocation17_spill] sm:$0xff] }
 0x38b   :  { %2062 = vmatpush.msra.mxu1 %v2899_v36  ;;  %v3967_v36 = vld [vmem:[#allocation39_spill] sm:$0xff] }
 0x38c   :  { %2620 = vmatmul.msk.bf16.vlgmr.msrb.gmra.mxu0 %vm1779_vm2, %v1777_v51  ;;  %v1832_v51 = vperm.slane %v1814_v14, 4 }
 0x38d   :  { %2068 = vmatpush.msra.mxu1 %v2901_v37  ;;  %1961 = vmatpush.msra.mxu0 %v2829_v3  ;;  %v3971_v37 = vld [vmem:[#allocation48_spill] sm:$0xff] }
 0x38f   :  { %2074 = vmatpush.msra.mxu1 %v2917_v43  ;;  %1963 = vmatpush.msra.mxu0 %v3964_v42  ;;  %v3974_v43 = vld [vmem:[#allocation15_spill] sm:$0xff] }
 0x391   :  { %2080 = vmatpush.msra.mxu1 %v3965_v29  ;;  %1965 = vmatpush.msra.mxu0 %v3966_v23 }
 0x393   :  { %2086 = vmatpush.msra.mxu1 %v3967_v36  ;;  %1967 = vmatpush.msra.mxu0 %v3968_v20 }
 0x395   :  { %2092 = vmatpush.msra.mxu1 %v3969_v31  ;;  %1969 = vmatpush.msra.mxu0 %v3970_v11 }
 0x397   :  { %2098 = vmatpush.msra.mxu1 %v3971_v37  ;;  %1971 = vmatpush.msra.mxu0 %v3972_v16 }
 0x399   :  { %2104 = vmatpush.msra.mxu1 %v3973_v12  ;;  %1973 = vmatpush.msra.mxu0 %v3974_v43 }
 0x39b   :  { %2110 = vmatpush.msra.mxu1 %v3975_v47  ;;  %1975 = vmatpush.msra.mxu0 %v3976_v10  ;;  %v1830_v47 = vperm.slane %v1814_v14, 3 }
 0x39d   :  { %2116 = vmatpush.msra.mxu1 %v3977_v55  ;;  %1977 = vmatpush.msra.mxu0 %v3978_v9  ;;  %v1826_v55 = vperm.slane %v1814_v14, 2 }
 0x39f   :  { %2122 = vmatpush.msra.mxu1 %v3979_v5  ;;  %1979 = vmatpush.msra.mxu0 %v3980_v50 }
 0x3a1   :  { %2128 = vmatpush.msra.mxu1 %v3981_v59  ;;  %1981 = vmatpush.msra.mxu0 %v3982_v18 }
 0x3a3   :  { %2134 = vmatpush.msra.mxu1 %v3983_v62  ;;  %1983 = vmatpush.msra.mxu0 %v3984_v17 }
 0x3a5   :  { %2140 = vmatpush.msra.mxu1 %v3985_v57  ;;  %1985 = vmatpush.msra.mxu0 %v3986_v4 }
 0x3a7   :  { %2146 = vmatpush.msra.mxu1 %v3987_v25  ;;  %1987 = vmatpush.msra.mxu0 %v3988_v15 }
 0x3a9   :  { %2152 = vmatpush.msra.mxu1 %v3989_v54  ;;  %1989 = vmatpush.msra.mxu0 %v3990_v19 }
 0x3ab   :  { %1991 = vmatpush.msra.mxu0 %v3991_v45  ;;  %2454 = vmatpush.msrb.mxu1 %v2829_v3 }
 0x3ad   :  { %2359 = vmatpush.msrb.mxu0 %v3992_v35  ;;  %2456 = vmatpush.msrb.mxu1 %v3964_v42 }
 0x3af   :  { %2363 = vmatpush.msrb.mxu0 %v3993_v52  ;;  %2458 = vmatpush.msrb.mxu1 %v3966_v23 }
 0x3b1   :  { %2367 = vmatpush.msrb.mxu0 %v3994_v2  ;;  %2460 = vmatpush.msrb.mxu1 %v3968_v20 }
 0x3b3   :  { %2371 = vmatpush.msrb.mxu0 %v3995_v40  ;;  %2462 = vmatpush.msrb.mxu1 %v3970_v11  ;;  %v2640_v40 = vld [vmem:[%s3745_s10] sm:$0xff] }
 0x3b5   :  { %2375 = vmatpush.msrb.mxu0 %v3996_v22  ;;  %2464 = vmatpush.msrb.mxu1 %v3972_v16  ;;  %v1818_v22 = vperm.slane %v1814_v14, 0 }
 0x3b7   :  { %2379 = vmatpush.msrb.mxu0 %v3997_v56  ;;  %2466 = vmatpush.msrb.mxu1 %v3974_v43  ;;  %v1822_v56 = vperm.slane %v1814_v14, 1 }
 0x3b9   :  { %2383 = vmatpush.msrb.mxu0 %v3998_v21  ;;  %2468 = vmatpush.msrb.mxu1 %v3976_v10 }
 0x3bb   :  { %2387 = vmatpush.msrb.mxu0 %v3999_v28  ;;  %2470 = vmatpush.msrb.mxu1 %v3978_v9 }
 0x3bd   :  { %2391 = vmatpush.msrb.mxu0 %v4000_v8  ;;  %2472 = vmatpush.msrb.mxu1 %v3980_v50 }
 0x3bf   :  { %2395 = vmatpush.msrb.mxu0 %v4001_v39  ;;  %2474 = vmatpush.msrb.mxu1 %v3982_v18 }
 0x3c1   :  { %2399 = vmatpush.msrb.mxu0 %v4002_v49  ;;  %2476 = vmatpush.msrb.mxu1 %v3984_v17 }
 0x3c3   :  { %2403 = vmatpush.msrb.mxu0 %v4003_v26  ;;  %2478 = vmatpush.msrb.mxu1 %v3986_v4 }
 0x3c5   :  { %2407 = vmatpush.msrb.mxu0 %v4004_v44  ;;  %2480 = vmatpush.msrb.mxu1 %v3988_v15  ;;  %v2638_v44 = vld [vmem:[%s3743_s8] sm:$0xff] }
 0x3c7   :  { %2411 = vmatpush.msrb.mxu0 %v4005_v46  ;;  %2482 = vmatpush.msrb.mxu1 %v3990_v19  ;;  %v4008_v46 = vld [vmem:[#allocation13_spill] sm:$0xff] }
 0x3c9   :  { %2415 = vmatpush.msrb.mxu0 %v4006_v6  ;;  %2484 = vmatpush.msrb.mxu1 %v3991_v45  ;;  %v4010_v6 = vld [vmem:[#allocation16_spill] sm:$0xff] }
 0x3cb   :  { %2419 = vmatpush.msrb.mxu0 %v4007_v7 }
 0x407   :  { %v3617_v54 = vpop.f32.mrf.mxu1 }
 0x408   :  { %v1922_v35 = vpack.c.bf16 %v3617_v54, %v3617_v54 }
 0x409   :  { %v1792_v32 = vpop.f32.mrf.mxu0 }
 0x40a   :  { %1842 = vrot.lane.b32.xlu1 %v1792_v32, %s2755_s26  ;;  %1838 = vrot.lane.b32.xlu0 %v1792_v32, %s2756_s27  ;;  %v1833_v12 = vmul.f32 %v1832_v51, %v1792_v32  ;;  %v1940_v2 = vsel %vm1938_vm3, %v1922_v35, 0 }
 0x40b   :  { %1846 = vrot.lane.b32.xlu2 %v1792_v32, %s2757_s1  ;;  %1949 = vmatpush.bf16.msrb.mxu3 %v1940_v2 }
 0x40e   :  { %2636 = vmatmul.msk.bf16.vlgmr.msrb.gmra.mxu3 %vm1931_vm4, %v2640_v40 }
 0x40f   :  { %2276 = vmatpush.msra.mxu3 %v2829_v3  ;;  %v1812_v49 = vpop.f32.mrf.mxu1  ;;  %v1921_v3 = vld [vmem:[%s3745_s10 + $0x8] sm:$0xf] }
 0x411   :  { %v1794_v53 = vpop.f32.mrf.mxu0  ;;  %2278 = vmatpush.msra.mxu3 %v3964_v42  ;;  %v1928_v42 = vunpack.c.l.b16 %v1921_v3 }
 0x412   :  { %1828 = vrot.lane.b32.xlu1 %v1792_v32, %s2758_s7  ;;  %1824 = vrot.lane.b32.xlu0 %v1792_v32, %s2759_s28  ;;  %v4020_v53 = vld [vmem:[#allocation50_spill] sm:$0xff]  ;;  %s2607_s7 = sshll.u32 %s3746_s11, 4  ;;  %s2608_s7 = int_to_ptr.hbm [resolvable:$true] %s2607_s7 }
 0x413   :  { %1834 = vrot.lane.b32.xlu2 %v1792_v32, %s2760_s29  ;;  %2280 = vmatpush.msra.mxu3 %v3966_v23  ;;  %v4009_v23 = vld [vmem:[#allocation14_spill] sm:$0xff]  ;;  %v1930_v7 = vpack.c.b16 %v1928_v42, %v1928_v42 }
 0x415   :  { %2282 = vmatpush.msra.mxu3 %v3968_v20  ;;  %v4012_v20 = vld [vmem:[#allocation18_spill] sm:$0xff] }
 0x417   :  { %2284 = vmatpush.msra.mxu3 %v3970_v11  ;;  %v4013_v11 = vld [vmem:[#allocation26_spill] sm:$0xff] }
 0x419   :  { %2286 = vmatpush.msra.mxu3 %v3972_v16  ;;  %v4014_v16 = vld [vmem:[#allocation27_spill] sm:$0xff] }
 0x41a   :  { %1865 = vperm.xlu1 %2656, %v1859_v0   ;;  %1820 = vrot.lane.b32.xlu0 %v1792_v32, %s2753_s23  ;;  %v4022_v0 = vld [vmem:[#allocation58_spill] sm:$0xff] }
 0x41b   :  { %1816 = vrot.lane.b32.xlu2 %v1792_v32, %s2761_s13  ;;  %2288 = vmatpush.msra.mxu3 %v3974_v43  ;;  %v2639_v43 = vld [vmem:[%s3743_s8 + $0x8] sm:$0xff]  ;;  %s2762_s8 = smov [#allocation5]  }
 0x41c   :  { %s2605_s26 = sshll.u32 %s2762_s8, 4  ;;  %s2606_s26 = int_to_ptr.vmem [resolvable:$true] %s2605_s26 }
 0x41d   :  { %2290 = vmatpush.msra.mxu3 %v3976_v10  ;;  %v4016_v10 = vld [vmem:[#allocation33_spill] sm:$0xff] }
 0x41e   :  { %2637 = vmatmul.msk.bf16.gmra.mxu3 %vm1931_vm4, %v1930_v7 }
 0x41f   :  { %2292 = vmatpush.msra.mxu3 %v3978_v9  ;;  %v4017_v9 = vld [vmem:[#allocation38_spill] sm:$0xff] }
 0x421   :  { %2294 = vmatpush.msra.mxu3 %v3980_v50  ;;  %v4018_v50 = vld [vmem:[#allocation42_spill] sm:$0xff] }
 0x422   :  { %1880 = vperm.xlu1 %2656, %v1862_v13   ;;  %1875 = vperm.xlu0 %2655, %v1861_v60  }
 0x423   :  { %1870 = vperm.xlu2 %2657, %v1860_v48   ;;  %2296 = vmatpush.msra.mxu3 %v3982_v18  ;;  %v4019_v18 = vld [vmem:[#allocation46_spill] sm:$0xff] }
 0x425   :  { %2298 = vmatpush.msra.mxu3 %v3984_v17  ;;  %v4021_v17 = vld [vmem:[#allocation55_spill] sm:$0xff] }
 0x427   :  { %2300 = vmatpush.msra.mxu3 %v3986_v4  ;;  %v4023_v4 = vld [vmem:[#allocation61_spill] sm:$0xff] }
 0x429   :  { %2302 = vmatpush.msra.mxu3 %v3988_v15 }
 0x42b   :  { %2304 = vmatpush.msra.mxu3 %v3990_v19 }
 0x42d   :  { %2306 = vmatpush.msra.mxu3 %v3991_v45 }
 0x465   :  { %v1847_v63 = vpop.permute.xlu2 %1846 }
 0x466   :  { %v1849_v58 = vmul.f32 %v2658_v1, %v1847_v63 }
 0x468   :  { %v1854_v34 = vpack.c.bf16 %v1792_v32, %v1849_v58  ;;  %v4015_v32 = vld [vmem:[#allocation30_spill] sm:$0xff] }
 0x46a   :  { %1903 = vmatpush.bf16.msrb.mxu2 %v1854_v34 }
 0x46d   :  { %v1835_v27 = vpop.permute.xlu2 %1834 }
 0x46e   :  { %v1837_v31 = vmul.f32 %v1836_v33, %v1835_v27 }
 0x470   :  { %v1852_v5 = vpack.c.bf16 %v1837_v31, %v1833_v12 }
 0x475   :  { %v1817_v21 = vpop.permute.xlu2 %1816 }
 0x476   :  { %v1819_v8 = vmul.f32 %v1818_v22, %v1817_v21 }
 0x47c   :  { %v1843_v41 = vpop.permute.xlu1 %1842  ;;  %v1839_v24 = vpop.permute.xlu0 %1838 }
 0x47d   :  { %v1845_v29 = vmul.f32 %v1844_v38, %v1843_v41  ;;  %v1841_v36 = vmul.f32 %v1840_v61, %v1839_v24  ;;  %v1871_v58 = vpop.permute.xlu2 %1870 }
 0x47f   :  { %v1853_v37 = vpack.c.bf16 %v1845_v29, %v1841_v36 }
 0x481   :  { %1904 = vmatpush.bf16.msrb.mxu2 %v1853_v37 }
 0x484   :  { %v1829_v59 = vpop.permute.xlu1 %1828  ;;  %v1825_v62 = vpop.permute.xlu0 %1824 }
 0x485   :  { %v1831_v57 = vmul.f32 %v1830_v47, %v1829_v59  ;;  %v1827_v25 = vmul.f32 %v1826_v55, %v1825_v62  ;;  %1905 = vmatpush.bf16.msrb.mxu2 %v1852_v5 }
 0x487   :  { %v1851_v52 = vpack.c.bf16 %v1831_v57, %v1827_v25 }
 0x489   :  { %1906 = vmatpush.bf16.msrb.mxu2 %v1851_v52 }
 0x48c   :  { %v1821_v28 = vpop.permute.xlu0 %1820  ;;  %v1866_v60 = vpop.permute.xlu1 %1865 }
 0x48d   :  { %v1823_v39 = vmul.f32 %v1822_v56, %v1821_v28 }
 0x48f   :  { %v1850_v26 = vpack.c.bf16 %v1823_v39, %v1819_v8 }
 0x491   :  { %1907 = vmatpush.bf16.msrb.mxu2 %v1850_v26  ;;  %v3669_v13 = vpop.f32.mrf.mxu3 }
 0x492   :  { %v2024_v2 = vand.u32 4294901760, %v3669_v13 }
 0x494   :  { %2630 = vmatmul.msk.bf16.vlgmr.msrb.gmra.mxu2 %vm1893_vm5, %v2638_v44  ;;  %v1876_v51 = vpop.permute.xlu0 %1875  ;;  %v1881_v59 = vpop.permute.xlu1 %1880  ;;  %v2025_v56 = vsub.f32 %v3669_v13, %v2024_v2 }
 0x495   :  { %2188 = vmatpush.msra.mxu2 %v4008_v46 }
 0x496   :  { %v2026_v8 = vand.u32 4294901760, %v2025_v56 }
 0x497   :  { %2191 = vmatpush.msra.mxu2 %v4009_v23 }
 0x498   :  { %v2027_v26 = vsub.f32 %v2025_v56, %v2026_v8 }
 0x499   :  { %2194 = vmatpush.msra.mxu2 %v4010_v6  ;;  %v3679_v1 = vpop.f32.mrf.mxu3  ;;  %v2048_v6 = vand.u32 4294901760, %v3617_v54 }
 0x49a   :  { %v2032_v39 = vand.u32 4294901760, %v3679_v1  ;;  %v2028_v44 = vand.u32 4294901760, %v2027_v26 }
 0x49b   :  { %2197 = vmatpush.msra.mxu2 %v4011_v30 }
 0x49c   :  { %v2033_v49 = vsub.f32 %v3679_v1, %v2032_v39 }
 0x49d   :  { %2200 = vmatpush.msra.mxu2 %v4012_v20 }
 0x49e   :  { %v2034_v3 = vand.u32 4294901760, %v2033_v49 }
 0x49f   :  { %2203 = vmatpush.msra.mxu2 %v4013_v11  ;;  %v2049_v11 = vsub.f32 %v3617_v54, %v2048_v6 }
 0x4a0   :  { %v2035_v23 = vsub.f32 %v2033_v49, %v2034_v3 }
 0x4a1   :  { %2206 = vmatpush.msra.mxu2 %v4014_v16  ;;  %v3689_v41 = vpop.f32.mrf.mxu3 }
 0x4a2   :  { %v2040_v46 = vand.u32 4294901760, %v3689_v41  ;;  %v2036_v7 = vand.u32 4294901760, %v2035_v23 }
 0x4a3   :  { %2209 = vmatpush.msra.mxu2 %v4015_v32 }
 0x4a4   :  { %2631 = vmatmul.msk.bf16.gmra.mxu2 %vm1893_vm5, %v2639_v43  ;;  %v2041_v42 = vsub.f32 %v3689_v41, %v2040_v46  ;;  %v2050_v43 = vand.u32 4294901760, %v2049_v11 }
 0x4a5   :  { %2212 = vmatpush.msra.mxu2 %v4016_v10 }
 0x4a6   :  { %v2042_v30 = vand.u32 4294901760, %v2041_v42  ;;  %v2051_v32 = vsub.f32 %v2049_v11, %v2050_v43 }
 0x4a7   :  { %2215 = vmatpush.msra.mxu2 %v4017_v9 }
 0x4a8   :  { %v2043_v20 = vsub.f32 %v2041_v42, %v2042_v30  ;;  %v2052_v10 = vand.u32 4294901760, %v2051_v32 }
 0x4a9   :  { %2218 = vmatpush.msra.mxu2 %v4018_v50  ;;  %v1958_v55 = vpop.f32.mrf.mxu3 }
 0x4aa   :  { %v2044_v16 = vand.u32 4294901760, %v2043_v20 }
 0x4ab   :  { %2221 = vmatpush.msra.mxu2 %v4019_v18 }
 0x4ad   :  { %2224 = vmatpush.msra.mxu2 %v4020_v53 }
 0x4af   :  { %2227 = vmatpush.msra.mxu2 %v4021_v17 }
 0x4b1   :  { %2230 = vmatpush.msra.mxu2 %v4022_v0 }
 0x4b3   :  { %2233 = vmatpush.msra.mxu2 %v4023_v4 }
 0x517   :  { %v1909_v15 = vpop.f32.mrf.mxu2 }
 0x518   :  { %v3671_v48 = vadd.f32 %v1909_v15, %v1866_v60 }
 0x51a   :  { %v3674_v19 = vand.u32 4294901760, %v3671_v48 }
 0x51c   :  { %v1993_v45 = vsub.f32 %v3671_v48, %v3674_v19  ;;  %2154 = vmatmul.f32.vlgmr.msra.gmra.mxu1 %v3674_v19 }
 0x51e   :  { %v1994_v63 = vand.u32 4294901760, %v1993_v45  ;;  %2236 = vmatmul.f32.vlgmr.msra.gmra.mxu2 %v1993_v45 }
 0x51f   :  { %v1911_v34 = vpop.f32.mrf.mxu2 }
 0x520   :  { %v3681_v14 = vadd.f32 %v1911_v34, %v1871_v58  ;;  %2310 = vmatmul.f32.vlgmr.msra.gmra.mxu3 %v1994_v63  ;;  %v1995_v38 = vsub.f32 %v1993_v45, %v1994_v63 }
 0x522   :  { %v3684_v61 = vand.u32 4294901760, %v3681_v14  ;;  %v1996_v33 = vand.u32 4294901760, %v1995_v38 }
 0x524   :  { %1997 = vmatmul.f32.vlgmr.msra.gmra.mxu0 %v1996_v33  ;;  %2158 = vmatmul.f32.gmra.mxu1 %v3684_v61  ;;  %v2001_v27 = vsub.f32 %v3681_v14, %v3684_v61 }
 0x526   :  { %2241 = vmatmul.f32.gmra.mxu2 %v2001_v27  ;;  %v2002_v24 = vand.u32 4294901760, %v2001_v27 }
 0x527   :  { %v1914_v29 = vpop.f32.mrf.mxu2 }
 0x528   :  { %v3691_v36 = vadd.f32 %v1914_v29, %v1876_v51  ;;  %2316 = vmatmul.f32.gmra.mxu3 %v2002_v24  ;;  %v2003_v31 = vsub.f32 %v2001_v27, %v2002_v24 }
 0x52a   :  { %v3694_v37 = vand.u32 4294901760, %v3691_v36  ;;  %v2004_v12 = vand.u32 4294901760, %v2003_v31 }
 0x52c   :  { %2005 = vmatmul.f32.gmra.mxu0 %v2004_v12  ;;  %2162 = vmatmul.f32.gmra.mxu1 %v3694_v37  ;;  %v2009_v47 = vsub.f32 %v3691_v36, %v3694_v37 }
 0x52e   :  { %2246 = vmatmul.f32.gmra.mxu2 %v2009_v47  ;;  %v2010_v5 = vand.u32 4294901760, %v2009_v47 }
 0x52f   :  { %v1916_v62 = vpop.f32.mrf.mxu2 }
 0x530   :  { %v3699_v57 = vadd.f32 %v1916_v62, %v1881_v59  ;;  %2322 = vmatmul.f32.gmra.mxu3 %v2010_v5  ;;  %v2011_v25 = vsub.f32 %v2009_v47, %v2010_v5 }
 0x532   :  { %v2016_v35 = vand.u32 4294901760, %v3699_v57  ;;  %v2012_v52 = vand.u32 4294901760, %v2011_v25 }
 0x534   :  { %2013 = vmatmul.f32.gmra.mxu0 %v2012_v52  ;;  %2166 = vmatmul.f32.gmra.mxu1 %v2016_v35  ;;  %v2017_v40 = vsub.f32 %v3699_v57, %v2016_v35 }
 0x536   :  { %2251 = vmatmul.f32.gmra.mxu2 %v2017_v40  ;;  %v2018_v22 = vand.u32 4294901760, %v2017_v40 }
 0x538   :  { %2328 = vmatmul.f32.gmra.mxu3 %v2018_v22  ;;  %v2019_v21 = vsub.f32 %v2017_v40, %v2018_v22 }
 0x53a   :  { %v2020_v28 = vand.u32 4294901760, %v2019_v21 }
 0x53c   :  { %2021 = vmatmul.f32.gmra.mxu0 %v2020_v28  ;;  %2170 = vmatmul.f32.gmra.mxu1 %v2024_v2 }
 0x53e   :  { %2256 = vmatmul.f32.gmra.mxu2 %v2025_v56 }
 0x540   :  { %2334 = vmatmul.f32.gmra.mxu3 %v2026_v8 }
 0x544   :  { %2029 = vmatmul.f32.gmra.mxu0 %v2028_v44  ;;  %2174 = vmatmul.f32.gmra.mxu1 %v2032_v39 }
 0x546   :  { %2261 = vmatmul.f32.gmra.mxu2 %v2033_v49 }
 0x548   :  { %2340 = vmatmul.f32.gmra.mxu3 %v2034_v3 }
 0x54c   :  { %2037 = vmatmul.f32.gmra.mxu0 %v2036_v7  ;;  %2178 = vmatmul.f32.gmra.mxu1 %v2040_v46 }
 0x54e   :  { %2266 = vmatmul.f32.gmra.mxu2 %v2041_v42 }
 0x550   :  { %2346 = vmatmul.f32.gmra.mxu3 %v2042_v30 }
 0x554   :  { %2045 = vmatmul.f32.gmra.mxu0 %v2044_v16  ;;  %2182 = vmatmul.f32.gmra.mxu1 %v2048_v6 }
 0x556   :  { %2271 = vmatmul.f32.gmra.mxu2 %v2049_v11 }
 0x558   :  { %2352 = vmatmul.f32.gmra.mxu3 %v2050_v43 }
 0x55c   :  { %2053 = vmatmul.f32.gmra.mxu0 %v2052_v10  ;;  %2486 = vmatmul.f32.vlgmr.msrb.gmra.mxu1 %v3674_v19 }
 0x564   :  { %2421 = vmatmul.f32.vlgmr.msrb.gmra.mxu0 %v3674_v19  ;;  %2490 = vmatmul.f32.gmra.mxu1 %v3684_v61 }
 0x56c   :  { %2425 = vmatmul.f32.gmra.mxu0 %v3684_v61  ;;  %2494 = vmatmul.f32.gmra.mxu1 %v3694_v37 }
 0x574   :  { %2429 = vmatmul.f32.gmra.mxu0 %v3694_v37  ;;  %2498 = vmatmul.f32.gmra.mxu1 %v2016_v35 }
 0x57c   :  { %2433 = vmatmul.f32.gmra.mxu0 %v2016_v35  ;;  %2502 = vmatmul.f32.gmra.mxu1 %v2024_v2 }
 0x584   :  { %2437 = vmatmul.f32.gmra.mxu0 %v2024_v2  ;;  %2506 = vmatmul.f32.gmra.mxu1 %v2032_v39 }
 0x58c   :  { %2441 = vmatmul.f32.gmra.mxu0 %v2032_v39  ;;  %2510 = vmatmul.f32.gmra.mxu1 %v2040_v46 }
 0x594   :  { %2445 = vmatmul.f32.gmra.mxu0 %v2040_v46  ;;  %2514 = vmatmul.f32.gmra.mxu1 %v2048_v6 }
 0x599   :  { %v2155_v9 = vpop.f32.mrf.mxu1 }
 0x59c   :  { %2449 = vmatmul.f32.gmra.mxu0 %v2048_v6 }
 0x5a1   :  { %v1998_v50 = vpop.f32.mrf.mxu0  ;;  %v2159_v18 = vpop.f32.mrf.mxu1 }
 0x5a2   :  { %v2156_v53 = vadd.f32 %v2155_v9, %v1998_v50  ;;  %v2237_v51 = vpop.f32.mrf.mxu2 }
 0x5a3   :  { %v2311_v29 = vpop.f32.mrf.mxu3 }
 0x5a4   :  { %v2238_v39 = vadd.f32 %v2237_v51, %v2156_v53 }
 0x5a6   :  { %v2312_v44 = vadd.f32 %v2311_v29, %v2238_v39 }
 0x5a9   :  { %v2006_v17 = vpop.f32.mrf.mxu0  ;;  %v2163_v0 = vpop.f32.mrf.mxu1 }
 0x5aa   :  { %v2160_v4 = vadd.f32 %v2159_v18, %v2006_v17  ;;  %v2242_v47 = vpop.f32.mrf.mxu2 }
 0x5ab   :  { %v2317_v59 = vpop.f32.mrf.mxu3 }
 0x5ac   :  { %v2243_v6 = vadd.f32 %v2242_v47, %v2160_v4 }
 0x5ae   :  { %v2318_v43 = vadd.f32 %v2317_v59, %v2243_v6 }
 0x5b1   :  { %v2014_v60 = vpop.f32.mrf.mxu0  ;;  %v2167_v15 = vpop.f32.mrf.mxu1 }
 0x5b2   :  { %v2164_v19 = vadd.f32 %v2163_v0, %v2014_v60  ;;  %v2247_v62 = vpop.f32.mrf.mxu2 }
 0x5b3   :  { %v2323_v52 = vpop.f32.mrf.mxu3 }
 0x5b4   :  { %v2248_v17 = vadd.f32 %v2247_v62, %v2164_v19 }
 0x5b9   :  { %v2022_v45 = vpop.f32.mrf.mxu0  ;;  %v2171_v63 = vpop.f32.mrf.mxu1 }
 0x5ba   :  { %v2168_v58 = vadd.f32 %v2167_v15, %v2022_v45  ;;  %v2252_v22 = vpop.f32.mrf.mxu2 }
 0x5bb   :  { %v2329_v56 = vpop.f32.mrf.mxu3 }
 0x5bc   :  { %v2253_v29 = vadd.f32 %v2252_v22, %v2168_v58 }
 0x5be   :  { %v2330_v39 = vadd.f32 %v2329_v56, %v2253_v29 }
 0x5c1   :  { %v2030_v34 = vpop.f32.mrf.mxu0  ;;  %v2175_v38 = vpop.f32.mrf.mxu1 }
 0x5c2   :  { %v2172_v61 = vadd.f32 %v2171_v63, %v2030_v34  ;;  %v2257_v8 = vpop.f32.mrf.mxu2  ;;  %v2324_v34 = vadd.f32 %v2323_v52, %v2248_v17 }
 0x5c3   :  { %v2335_v49 = vpop.f32.mrf.mxu3 }
 0x5c4   :  { %v2258_v3 = vadd.f32 %v2257_v8, %v2172_v61 }
 0x5c6   :  { %v2336_v7 = vadd.f32 %v2335_v49, %v2258_v3 }
 0x5c9   :  { %v2038_v33 = vpop.f32.mrf.mxu0  ;;  %v2179_v27 = vpop.f32.mrf.mxu1 }
 0x5ca   :  { %v2176_v24 = vadd.f32 %v2175_v38, %v2038_v33  ;;  %v2262_v23 = vpop.f32.mrf.mxu2 }
 0x5cb   :  { %v2341_v16 = vpop.f32.mrf.mxu3 }
 0x5cc   :  { %v2263_v32 = vadd.f32 %v2262_v23, %v2176_v24 }
 0x5ce   :  { %v2342_v0 = vadd.f32 %v2341_v16, %v2263_v32 }
 0x5d1   :  { %v2046_v31 = vpop.f32.mrf.mxu0  ;;  %v2183_v37 = vpop.f32.mrf.mxu1 }
 0x5d2   :  { %v2180_v12 = vadd.f32 %v2179_v27, %v2046_v31  ;;  %v2267_v15 = vpop.f32.mrf.mxu2 }
 0x5d3   :  { %v2347_v33 = vpop.f32.mrf.mxu3 }
 0x5d4   :  { %v2268_v38 = vadd.f32 %v2267_v15, %v2180_v12 }
 0x5d6   :  { %v2348_v31 = vadd.f32 %v2347_v33, %v2268_v38 }
 0x5d9   :  { %v2054_v55 = vpop.f32.mrf.mxu0  ;;  %v2487_v5 = vpop.f32.mrf.mxu1 }
 0x5da   :  { %v2184_v47 = vadd.f32 %v2183_v37, %v2054_v55  ;;  %v2272_v8 = vpop.f32.mrf.mxu2 }
 0x5db   :  { %v2353_v3 = vpop.f32.mrf.mxu3 }
 0x5e1   :  { %v2422_v25 = vpop.f32.mrf.mxu0  ;;  %v2491_v35 = vpop.f32.mrf.mxu1 }
 0x5e2   :  { %v2423_v42 = vadd.f32 %v2422_v25, %v2312_v44 }
 0x5e4   :  { %v2488_v20 = vadd.f32 %v2487_v5, %v2423_v42 }
 0x5e6   :  { %v2518_v9 = vmul.f32 0.015625, %v2488_v20 }
 0x5e9   :  { %v2426_v2 = vpop.f32.mrf.mxu0  ;;  %v2495_v40 = vpop.f32.mrf.mxu1 }
 0x5ea   :  { %v2427_v50 = vadd.f32 %v2426_v2, %v2318_v43 }
 0x5ec   :  { %v2492_v4 = vadd.f32 %v2491_v35, %v2427_v50  ;;  %v2273_v35 = vadd.f32 %v2272_v8, %v2184_v47 }
 0x5ee   :  { %v2519_v27 = vmul.f32 0.015625, %v2492_v4 }
 0x5f1   :  { %v2430_v21 = vpop.f32.mrf.mxu0  ;;  %v2499_v28 = vpop.f32.mrf.mxu1 }
 0x5f2   :  { %v2431_v24 = vadd.f32 %v2430_v21, %v2324_v34 }
 0x5f4   :  { %v2496_v62 = vadd.f32 %v2495_v40, %v2431_v24 }
 0x5f6   :  { %v2520_v52 = vmul.f32 0.015625, %v2496_v62 }
 0x5f9   :  { %v2434_v26 = vpop.f32.mrf.mxu0  ;;  %v2503_v46 = vpop.f32.mrf.mxu1 }
 0x5fa   :  { %v2435_v12 = vadd.f32 %v2434_v26, %v2330_v39 }
 0x5fc   :  { %v2500_v58 = vadd.f32 %v2499_v28, %v2435_v12 }
 0x5fe   :  { %v2521_v23 = vmul.f32 0.015625, %v2500_v58 }
 0x601   :  { %v2438_v30 = vpop.f32.mrf.mxu0  ;;  %v2507_v53 = vpop.f32.mrf.mxu1 }
 0x602   :  { %v2439_v11 = vadd.f32 %v2438_v30, %v2336_v7 }
 0x604   :  { %v2504_v10 = vadd.f32 %v2503_v46, %v2439_v11  ;;  %v2354_v46 = vadd.f32 %v2353_v3, %v2273_v35 }
 0x606   :  { %v3717_v18 = vmul.f32 0.015625, %v2504_v10 }
 0x608   :  { %v2526_v60 = vmax.f32 %v2518_v9, %v3717_v18 }
 0x609   :  { %v2442_v45 = vpop.f32.mrf.mxu0  ;;  %v2511_v59 = vpop.f32.mrf.mxu1 }
 0x60a   :  { %v2443_v63 = vadd.f32 %v2442_v45, %v2342_v0 }
 0x60c   :  { %v2508_v61 = vadd.f32 %v2507_v53, %v2443_v63 }
 0x60e   :  { %v2523_v51 = vmul.f32 0.015625, %v2508_v61 }
 0x610   :  { %v2527_v5 = vmax.f32 %v2519_v27, %v2523_v51 }
 0x611   :  { %v2446_v19 = vpop.f32.mrf.mxu0  ;;  %v2515_v37 = vpop.f32.mrf.mxu1 }
 0x612   :  { %v2530_v25 = vmax.f32 %v2526_v60, %v2527_v5  ;;  %v2447_v2 = vadd.f32 %v2446_v19, %v2348_v31 }
 0x614   :  { %v2512_v49 = vadd.f32 %v2511_v59, %v2447_v2 }
 0x616   :  { %v2524_v44 = vmul.f32 0.015625, %v2512_v49 }
 0x618   :  { %v2528_v21 = vmax.f32 %v2520_v52, %v2524_v44 }
 0x619   :  { %v2450_v42 = vpop.f32.mrf.mxu0 }
 0x61a   :  { %v2451_v22 = vadd.f32 %v2450_v42, %v2354_v46 }
 0x61c   :  { %v2516_v55 = vadd.f32 %v2515_v37, %v2451_v22 }
 0x61e   :  { %v2525_v6 = vmul.f32 0.015625, %v2516_v55 }
 0x620   :  { %v2529_v40 = vmax.f32 %v2521_v23, %v2525_v6 }
 0x622   :  { %v2531_v7 = vmax.f32 %v2528_v21, %v2529_v40 }
 0x624   :  { %v2532_v30 = vmax.f32 %v2530_v25, %v2531_v7 }
 0x626   :  { %v2533_v20 = vrot.slane %v2532_v30, 4 }
 0x628   :  { %v2534_v56 = vmax.f32 %v2532_v30, %v2533_v20 }
 0x62a   :  { %v2535_v11 = vrot.slane %v2534_v56, 2 }
 0x62c   :  { %v2536_v16 = vmax.f32 %v2534_v56, %v2535_v11 }
 0x62e   :  { %v2537_v43 = vrot.slane %v2536_v16, 1 }
 0x630   :  { %v2538_v26 = vmax.f32 %v2536_v16, %v2537_v43 }
 0x632   :  { %v2539_v32 = vsub.f32 %v2518_v9, %v2538_v26  ;;  %v2540_v10 = vsub.f32 %v2519_v27, %v2538_v26  ;;  %v2541_v50 = vsub.f32 %v2520_v52, %v2538_v26  ;;  %v2542_v53 = vsub.f32 %v2521_v23, %v2538_v26 }
 0x633   :  { %v2543_v28 = vsub.f32 %v3717_v18, %v2538_v26  ;;  %v2544_v17 = vsub.f32 %v2523_v51, %v2538_v26  ;;  %v2545_v0 = vsub.f32 %v2524_v44, %v2538_v26  ;;  %v2546_v34 = vsub.f32 %v2525_v6, %v2538_v26 }
 0x634   :  { %v2547_v60 = vmul.f32 1.442695, %v2539_v32  ;;  %v2549_v15 = vmul.f32 1.442695, %v2540_v10  ;;  %v2551_v45 = vmul.f32 1.442695, %v2541_v50 }
 0x635   :  { %v2553_v4 = vmul.f32 1.442695, %v2542_v53  ;;  %v2555_v63 = vmul.f32 1.442695, %v2543_v28  ;;  %v2557_v38 = vmul.f32 1.442695, %v2544_v17 }
 0x636   :  { %2677 = vpow2.f32 %v2547_v60  ;;  %v2559_v33 = vmul.f32 1.442695, %v2545_v0  ;;  %v2561_v18 = vmul.f32 1.442695, %v2546_v34 }
 0x637   :  { %2679 = vpow2.f32 %v2549_v15 }
 0x638   :  { %2681 = vpow2.f32 %v2551_v45 }
 0x639   :  { %2683 = vpow2.f32 %v2553_v4 }
 0x63a   :  { %2685 = vpow2.f32 %v2555_v63 }
 0x63b   :  { %2687 = vpow2.f32 %v2557_v38 }
 0x63c   :  { %v2678_v61 = vpop.eup %2677  ;;  %2689 = vpow2.f32 %v2559_v33 }
 0x63d   :  { %v2680_v9 = vpop.eup %2679  ;;  %2691 = vpow2.f32 %v2561_v18 }
 0x63e   :  { %v2563_v27 = vadd.f32 %v2680_v9, %v2678_v61  ;;  %v2682_v24 = vpop.eup %2681 }
 0x63f   :  { %v2684_v29 = vpop.eup %2683 }
 0x640   :  { %v2564_v51 = vadd.f32 %v2682_v24, %v2563_v27  ;;  %v2686_v47 = vpop.eup %2685 }
 0x641   :  { %v2688_v59 = vpop.eup %2687 }
 0x642   :  { %v2565_v31 = vadd.f32 %v2684_v29, %v2564_v51  ;;  %v2690_v62 = vpop.eup %2689 }
 0x643   :  { %v2692_v2 = vpop.eup %2691 }
 0x644   :  { %v2566_v5 = vadd.f32 %v2686_v47, %v2565_v31 }
 0x646   :  { %v2567_v19 = vadd.f32 %v2688_v59, %v2566_v5 }
 0x648   :  { %v2568_v25 = vadd.f32 %v2690_v62, %v2567_v19 }
 0x64a   :  { %v2569_v8 = vadd.f32 %v2692_v2, %v2568_v25 }
 0x64c   :  { %v2570_v39 = vrot.slane %v2569_v8, 4 }
 0x64e   :  { %v2571_v35 = vadd.f32 %v2570_v39, %v2569_v8 }
 0x650   :  { %v2572_v49 = vrot.slane %v2571_v35, 2 }
 0x652   :  { %v2573_v52 = vadd.f32 %v2572_v49, %v2571_v35 }
 0x654   :  { %v2574_v12 = vrot.slane %v2573_v52, 1 }
 0x656   :  { %v2575_v44 = vadd.f32 %v2574_v12, %v2573_v52 }
 0x658   :  { %2693 = vrcp.f32 %v2575_v44 }
 0x65e   :  { %v2694_v3 = vpop.eup %2693 }
 0x65f   :  { %v2584_v46 = vmul.f32 %v2694_v3, %v2692_v2  ;;  %v2577_v21 = vmul.f32 %v2694_v3, %v2678_v61  ;;  %v2578_v42 = vmul.f32 %v2694_v3, %v2680_v9  ;;  %v2579_v58 = vmul.f32 %v2694_v3, %v2682_v24 }
 0x660   :  { %v2580_v22 = vmul.f32 %v2694_v3, %v2684_v29  ;;  %v2581_v37 = vmul.f32 %v2694_v3, %v2686_v47  ;;  %v2582_v55 = vmul.f32 %v2694_v3, %v2688_v59  ;;  %v2583_v23 = vmul.f32 %v2694_v3, %v2690_v62 }
 0x661   :  { %v2592_v6 = vmul.f32 %v2584_v46, %v3617_v54  ;;  %v2585_v40 = vmul.f32 %v2577_v21, %v3671_v48  ;;  %v2586_v7 = vmul.f32 %v2578_v42, %v3681_v14  ;;  %v2587_v30 = vmul.f32 %v2579_v58, %v3691_v36 }
 0x662   :  { %v2588_v20 = vmul.f32 %v2580_v22, %v3699_v57  ;;  %v2589_v56 = vmul.f32 %v2581_v37, %v3669_v13  ;;  %v2590_v11 = vmul.f32 %v2582_v55, %v3679_v1  ;;  %v2591_v16 = vmul.f32 %v2583_v23, %v3689_v41 }
 0x664   :  { %v2593_v43 = vadd.f32 %v2589_v56, %v2585_v40  ;;  %v2594_v26 = vadd.f32 %v2590_v11, %v2586_v7  ;;  %v2595_v32 = vadd.f32 %v2591_v16, %v2587_v30  ;;  %v2596_v10 = vadd.f32 %v2592_v6, %v2588_v20 }
 0x666   :  { %2597 = vst [vmem:[#allocation5] sm:$0xff] %v2593_v43 }
 0x667   :  { %2598 = vst [vmem:[#allocation5 + $0x8] sm:$0xff] %v2594_v26 }
 0x668   :  { %2599 = vst [vmem:[#allocation5 + $0x10] sm:$0xff] %v2595_v32 }
 0x669   :  { %2600 = vst [vmem:[#allocation5 + $0x18] sm:$0xff] %v2596_v10 }
 0x66a   :  { %2613 = dma.vmem_to_hbm [thread:$0]  %s2606_s26, 512, %s2608_s7, [#allocation4], %s2752_s22, %s2752_s22, %s2753_s23  }
 0x66b   :  { %2749 = dma.done.wait [#allocation4], 512  }
 0x66c   :  { %2750 = vsyncadd [#allocation4], 4294966784 }
 0x66d   :  { %2618 = vsyncpa [#allocation3], 1 }
 0x66e   :  { %2619 = vsyncpa [#allocation4], 1 }

</bundles_post_ra>
